<compile_context>
chip_gen: v6e
topology: v6e:2x2x1
jax: 0.10.0
libtpu: 0.0.40
codegen_flags: <defaults>
</compile_context>

<pallas_src>
import functools

import jax
import jax.numpy as jnp
from jax import lax
from jax.experimental import pallas as pl
from jax.experimental.pallas import tpu as pltpu

BERT_DIM = 768     # Conv1d in_channels (fixed by the module)
CONV_DIM = 128     # Conv1d out_channels
LSTM_H = 64        # LSTM hidden size (bidirectional -> 128 pooled)
KSIZE = 3          # Conv1d kernel_size, padding=1


def _cdiv(a, b):
    return -(-a // b)


def _round_up8(x):
    return ((x + 7) // 8) * 8


def _kernel(x_ref,        # (t_pad, bt, 768) bf16, time-major hidden states tile
            wc_ref,       # (768, 384)       fused conv weight [tap0|tap1|tap2], bf16
            wihf_ref,     # (128, 256)       fwd LSTM W_ih^T, bf16
            whhf_ref,     # (64, 256)        fwd LSTM W_hh^T, bf16
            bf_ref,       # (1, 256)         fwd gate bias (b_ih + b_hh + bc@W_ih), f32
            wihb_ref,     # (128, 256)       bwd LSTM W_ih^T, bf16
            bb_ref,       # (1, 256)         bwd gate bias (b_ih + b_hh + bc@W_ih), f32
            wfc_ref,      # (128, nc_pad)    fc weight^T (zero padded), f32
            bfc_ref,      # (1, nc_pad)      fc bias (zero padded), f32
            out_ref,      # (1, bt, nc_pad)  logits for this batch tile
            conv_scr,     # VMEM (t_pad*bt, 128) f32: conv output (bias-free)
            gates_scr,    # VMEM (t_pad, bt, 256) f32: hoisted x@W_ih + b, t-major
            *, t_total, t_valid, b_tile, unroll):
    n = t_total * b_tile
    H = LSTM_H

    # --- Conv1d(768->128, k=3, pad=1): one fused bf16 MXU matmul, taps split on
    # the lane axis; time shifts are static sub-slice accumulates into scratch.
    x_flat = x_ref[...].reshape(n, BERT_DIM)                    # bf16, row r = t*bt + b
    y = jnp.dot(x_flat, wc_ref[...],
                preferred_element_type=jnp.float32)             # (n, 384) f32
    conv_scr[...] = y[:, CONV_DIM:2 * CONV_DIM]                 # center tap
    if t_valid > 1:
        # tap k=0 (x[t-1] weight): feeds rows with t >= 1
        conv_scr[pl.ds(b_tile, n - b_tile), :] = (
            conv_scr[pl.ds(b_tile, n - b_tile), :] + y[:n - b_tile, :CONV_DIM])
        # tap k=2 (x[t+1] weight): feeds rows with t <= t_valid - 2
        lim = (t_valid - 1) * b_tile
        conv_scr[pl.ds(0, lim), :] = (
            conv_scr[pl.ds(0, lim), :] + y[b_tile:b_tile + lim, 2 * CONV_DIM:])

    conv_bf = conv_scr[...].astype(jnp.bfloat16)                # (n, 128)

    # --- Hoisted input->gate projection: ONE big MXU matmul, stored t-major so
    # each recurrence step reads a contiguous (bt, 256) tile.
    gates_x = jnp.dot(conv_bf, wihf_ref[...],
                      preferred_element_type=jnp.float32)       # (n, 256)
    gates_scr[...] = (gates_x + bf_ref[...]).reshape(t_total, b_tile, 4 * H)

    def cell(gates, c):
        i_f = jax.nn.sigmoid(gates[:, :2 * H])                  # fused 128-lane sigmoid
        g = jnp.tanh(gates[:, 2 * H:3 * H])
        o = jax.nn.sigmoid(gates[:, 3 * H:])
        c_new = i_f[:, H:] * c + i_f[:, :H] * g
        h_new = o * jnp.tanh(c_new)
        return h_new, c_new

    # --- Forward LSTM recurrence: per step only h @ W_hh + elementwise gates ---
    whh = whhf_ref[...]                                         # (64, 256) bf16, hoisted
    h0 = jnp.zeros((b_tile, H), jnp.bfloat16)
    c0 = jnp.zeros((b_tile, H), jnp.float32)

    def fwd_body(t, carry):
        h, c = carry
        gates = gates_scr[t] + jnp.dot(h, whh,
                                       preferred_element_type=jnp.float32)
        h_new, c_new = cell(gates, c)
        return h_new.astype(jnp.bfloat16), c_new

    h_fwd, _ = lax.fori_loop(0, t_valid, fwd_body, (h0, c0), unroll=unroll)

    # --- Reverse direction: downstream consumes lstm_output[:, -1, :] only, which
    # for the reverse LSTM is its FIRST step at t = T-1 with h0 = c0 = 0 (so the
    # reverse W_hh contributes nothing).
    x_last = conv_scr[pl.ds((t_valid - 1) * b_tile, b_tile), :].astype(jnp.bfloat16)
    gates_b = (jnp.dot(x_last, wihb_ref[...],
                       preferred_element_type=jnp.float32) + bb_ref[...])
    h_bwd, _ = cell(gates_b, c0)

    # --- Dropout(eval) = identity; Linear(128 -> nc_pad), lane-dense store ---
    pooled = jnp.concatenate([h_fwd.astype(jnp.float32), h_bwd], axis=-1)  # (bt, 128)
    logits = (jnp.dot(pooled, wfc_ref[...], preferred_element_type=jnp.float32)
              + bfc_ref[...])                                   # (bt, nc_pad)
    out_ref[0] = logits


def _per_row_vmem_bytes(t_pad):
    # Per batch row, per timestep, bytes live during one grid step:
    #   double-buffered bf16 input block + conv matmul result (3 taps, f32, + a
    #   slice copy) + conv scratch / bf16 copy + hoisted-gates result + scratch.
    return t_pad * (2 * BERT_DIM * 2
                    + 2 * KSIZE * CONV_DIM * 4
                    + 3 * CONV_DIM * 4
                    + 2 * 4 * LSTM_H * 4)


def _pick_b_tile(B, t_pad, vmem_cap):
    per_row = _per_row_vmem_bytes(t_pad)
    budget = max(24 << 20, int(0.72 * vmem_cap) - (8 << 20))   # v5e/v6e ~84 MiB, v7x ~38 MiB
    cap = max(1, budget // per_row)
    if cap >= B and B <= 64:
        return B                       # one tile; batch block dim == full array dim
    # Want >= 2 tiles (megacore / pipelining) and a multiple-of-8 tile so the
    # (sublane, lane) constraint on the (bt, 768) block dims holds.
    cap = min(cap, max(8, _round_up8(_cdiv(B, 2))))
    bt = max(8, (min(cap, B) // 8) * 8)
    n = _cdiv(B, bt)
    if n > 1 and n % 2 == 1:           # v7x: prefer an even tile count (2 TensorCores)
        bt_alt = _round_up8(_cdiv(B, n + 1))
        if bt_alt >= 8 and _cdiv(B, bt_alt) % 2 == 0:
            bt = bt_alt
    return int(bt)


def _vmem_limit_bytes(b_tile, t_pad, vmem_cap):
    need = b_tile * _per_row_vmem_bytes(t_pad) + (16 << 20)    # + weights / slack
    return int(max(32 << 20, min(vmem_cap - (2 << 20), need)))


def bert_cnn_bilstm_head(hidden_states, params, *, num_classes, b_tile=None):
    """hidden_states: [B, T, 768] (= bert last_hidden_state). Returns [B, num_classes] f32."""
    B, T, C = hidden_states.shape
    assert C == BERT_DIM
    f32, bf16 = jnp.float32, jnp.bfloat16

    # bf16, time-major input (cast + transpose fuse into one XLA pass); pad T to a
    # multiple of 8 only if needed (zero time-padding matches the conv's own pad,
    # and the recurrence/masks only use the first T steps).
    t_pad = _round_up8(T)
    xT = jnp.transpose(hidden_states.astype(bf16), (1, 0, 2))   # (T, B, 768)
    if t_pad != T:
        xT = jnp.pad(xT, ((0, t_pad - T), (0, 0), (0, 0)))

    try:
        vmem_cap = int(pltpu.get_tpu_info().vmem_capacity_bytes)
    except Exception:
        vmem_cap = 64 << 20                                     # conservative (v7x)
    if b_tile is None:
        b_tile = _pick_b_tile(B, t_pad, vmem_cap)
    n_tiles = _cdiv(B, b_tile)

    # Lane-dense logits: pad num_classes up to a multiple of 128, slice afterwards.
    nc_pad = ((num_classes + 127) // 128) * 128
    wfc = jnp.zeros((2 * LSTM_H, nc_pad), f32).at[:, :num_classes].set(
        params["wfc"].astype(f32))
    bfc = jnp.zeros((1, nc_pad), f32).at[:, :num_classes].set(
        params["bfc"].astype(f32))

    # Fuse the 3 conv taps into one (768, 384) bf16 matrix: [tap0 | tap1 | tap2].
    wc_fused = jnp.concatenate([params["wc"][k] for k in range(KSIZE)],
                               axis=1).astype(bf16)
    # Fold the conv bias through W_ih into the LSTM gate biases (exact: the conv
    # output is consumed only by the two LSTM directions).
    bc = params["bc"].astype(f32)                               # (1, 128)
    b_f = (params["b_f"].astype(f32) + bc @ params["wih_f"].astype(f32))
    b_b = (params["b_b"].astype(f32) + bc @ params["wih_b"].astype(f32))

    unroll = 1
    for u in (8, 4, 2):
        if T % u == 0:
            unroll = u
            break

    kern = functools.partial(_kernel, t_total=t_pad, t_valid=T,
                             b_tile=b_tile, unroll=unroll)
    const2 = lambda b: (0, 0)

    out = pl.pallas_call(
        kern,
        out_shape=jax.ShapeDtypeStruct((n_tiles, b_tile, nc_pad), f32),
        grid=(n_tiles,),
        in_specs=[
            pl.BlockSpec((t_pad, b_tile, BERT_DIM), lambda b: (0, b, 0)),
            pl.BlockSpec((BERT_DIM, KSIZE * CONV_DIM), const2),
            pl.BlockSpec((CONV_DIM, 4 * LSTM_H), const2),
            pl.BlockSpec((LSTM_H, 4 * LSTM_H), const2),
            pl.BlockSpec((1, 4 * LSTM_H), const2),
            pl.BlockSpec((CONV_DIM, 4 * LSTM_H), const2),
            pl.BlockSpec((1, 4 * LSTM_H), const2),
            pl.BlockSpec((2 * LSTM_H, nc_pad), const2),
            pl.BlockSpec((1, nc_pad), const2),
        ],
        out_specs=pl.BlockSpec((1, b_tile, nc_pad), lambda b: (b, 0, 0)),
        scratch_shapes=[
            pltpu.VMEM((t_pad * b_tile, CONV_DIM), f32),
            pltpu.VMEM((t_pad, b_tile, 4 * LSTM_H), f32),
        ],
        compiler_params=pltpu.CompilerParams(
            dimension_semantics=("parallel",),
            vmem_limit_bytes=_vmem_limit_bytes(b_tile, t_pad, vmem_cap)),
    )(xT, wc_fused,
      params["wih_f"].astype(bf16), params["whh_f"].astype(bf16), b_f,
      params["wih_b"].astype(bf16), b_b, wfc, bfc)

    return out.reshape(n_tiles * b_tile, nc_pad)[:B, :num_classes]


# ----------------------- pure-JAX f32 reference (for checking) -----------------------
def reference(hidden_states, params, *, num_classes):
    B, T, _ = hidden_states.shape
    x_pad = jnp.pad(hidden_states, ((0, 0), (1, 1), (0, 0)))
    conv = sum(jnp.einsum("btc,cd->btd", x_pad[:, k:k + T, :], params["wc"][k])
               for k in range(KSIZE)) + params["bc"][None, :, :]   # [B, T, 128]

    def step(xt, h, c, wih, whh, b):
        g = xt @ wih + h @ whh + b
        i = jax.nn.sigmoid(g[:, :LSTM_H])
        f = jax.nn.sigmoid(g[:, LSTM_H:2 * LSTM_H])
        gg = jnp.tanh(g[:, 2 * LSTM_H:3 * LSTM_H])
        o = jax.nn.sigmoid(g[:, 3 * LSTM_H:])
        c = f * c + i * gg
        return o * jnp.tanh(c), c

    h = jnp.zeros((B, LSTM_H)); c = jnp.zeros((B, LSTM_H))
    for t in range(T):
        h, c = step(conv[:, t, :], h, c, params["wih_f"], params["whh_f"],
                    params["b_f"])
    # Reverse direction output at position T-1 == its first step from zero state.
    h0 = jnp.zeros((B, LSTM_H))
    hb, _ = step(conv[:, T - 1, :], h0, h0, params["wih_b"], params["whh_b"],
                 params["b_b"])
    pooled = jnp.concatenate([h, hb], axis=-1)
    return pooled @ params["wfc"] + params["bfc"]


def make_params(key, num_classes):
    ks = jax.random.split(key, 12)
    u = lambda k, shape, s: jax.random.uniform(k, shape, jnp.float32, -s, s)
    s_conv = 1.0 / (BERT_DIM * KSIZE) ** 0.5
    s_lstm = 1.0 / LSTM_H ** 0.5
    s_fc = 1.0 / (2 * LSTM_H) ** 0.5
    return {
        # conv weight stored tap-major, transposed: [k, in, out]
        "wc": u(ks[0], (KSIZE, BERT_DIM, CONV_DIM), s_conv),
        "bc": u(ks[1], (1, CONV_DIM), s_conv),
        # LSTM weights stored pre-transposed; gate order i, f, g, o along last dim
        "wih_f": u(ks[2], (CONV_DIM, 4 * LSTM_H), s_lstm),
        "whh_f": u(ks[3], (LSTM_H, 4 * LSTM_H), s_lstm),
        "b_f": u(ks[4], (1, 4 * LSTM_H), s_lstm),       # b_ih + b_hh combined
        "wih_b": u(ks[5], (CONV_DIM, 4 * LSTM_H), s_lstm),
        "whh_b": u(ks[6], (LSTM_H, 4 * LSTM_H), s_lstm),
        "b_b": u(ks[7], (1, 4 * LSTM_H), s_lstm),
        "wfc": u(ks[8], (2 * LSTM_H, num_classes), s_fc),
        "bfc": u(ks[9], (1, num_classes), s_fc),
    }


if __name__ == "__main__":
    B, T, NC = 2, 8, 4
    key = jax.random.PRNGKey(0)
    kx, kp = jax.random.split(key)
    # Stand-in for bert(...).last_hidden_state  (see TODO(synk) above).
    hidden_states = jax.random.normal(kx, (B, T, BERT_DIM), jnp.float32)
    params = make_params(kp, NC)

    out = jax.block_until_ready(
        bert_cnn_bilstm_head(hidden_states, params, num_classes=NC))
    ref = jax.block_until_ready(
        reference(hidden_states, params, num_classes=NC))

    assert out.shape == (B, NC), out.shape
    assert bool(jnp.all(jnp.isfinite(out)))
    # bf16 input / bf16 weights with f32 accumulation vs the f32 reference.
    assert jnp.allclose(out, ref, atol=3e-2, rtol=3e-2), (out, ref)
    print("KERNEL_OK")
</pallas_src>

<mosaic_0001>
module attributes {stable_mosaic.version = 11 : i64} {
  func.func @_kernel(%arg0: i32, %arg1: memref<8x2x768xbf16, #tpu.memory_space<vmem>>, %arg2: memref<768x384xbf16, #tpu.memory_space<vmem>>, %arg3: memref<128x256xbf16, #tpu.memory_space<vmem>>, %arg4: memref<64x256xbf16, #tpu.memory_space<vmem>>, %arg5: memref<1x256xf32, #tpu.memory_space<vmem>>, %arg6: memref<128x256xbf16, #tpu.memory_space<vmem>>, %arg7: memref<1x256xf32, #tpu.memory_space<vmem>>, %arg8: memref<128x128xf32, #tpu.memory_space<vmem>>, %arg9: memref<1x128xf32, #tpu.memory_space<vmem>>, %arg10: memref<1x2x128xf32, #tpu.memory_space<vmem>>, %arg11: memref<16x128xf32, #tpu.memory_space<vmem>>, %arg12: memref<8x2x256xf32, #tpu.memory_space<vmem>>) attributes {dimension_semantics = [#tpu.dimension_semantics<parallel>], iteration_bounds = array<i64: 1>, scalar_prefetch = 0 : i64, scratch_operands = 2 : i64, tpu.core_type = #tpu.core_type<tc>, window_params = [{transform_indices = @transform_0, window_bounds = array<i64: 8, 2, 768>}, {pipeline_mode = #tpu.pipeline_mode<synchronous>, transform_indices = @transform_1, window_bounds = array<i64: 768, 384>}, {pipeline_mode = #tpu.pipeline_mode<synchronous>, transform_indices = @transform_2, window_bounds = array<i64: 128, 256>}, {pipeline_mode = #tpu.pipeline_mode<synchronous>, transform_indices = @transform_3, window_bounds = array<i64: 64, 256>}, {pipeline_mode = #tpu.pipeline_mode<synchronous>, transform_indices = @transform_4, window_bounds = array<i64: 1, 256>}, {pipeline_mode = #tpu.pipeline_mode<synchronous>, transform_indices = @transform_5, window_bounds = array<i64: 128, 256>}, {pipeline_mode = #tpu.pipeline_mode<synchronous>, transform_indices = @transform_6, window_bounds = array<i64: 1, 256>}, {pipeline_mode = #tpu.pipeline_mode<synchronous>, transform_indices = @transform_7, window_bounds = array<i64: 128, 128>}, {pipeline_mode = #tpu.pipeline_mode<synchronous>, transform_indices = @transform_8, window_bounds = array<i64: 1, 128>}, {transform_indices = @transform_9, window_bounds = array<i64: 1, 2, 128>}]} {
    %c0 = arith.constant 0 : index
    %c0_0 = arith.constant 0 : index
    %c0_1 = arith.constant 0 : index
    %0 = vector.load %arg1[%c0, %c0_0, %c0_1] : memref<8x2x768xbf16, #tpu.memory_space<vmem>>, vector<8x2x768xbf16>
    %1 = vector.shape_cast %0 : vector<8x2x768xbf16> to vector<16x768xbf16>
    %c0_2 = arith.constant 0 : index
    %c0_3 = arith.constant 0 : index
    %2 = vector.load %arg2[%c0_2, %c0_3] : memref<768x384xbf16, #tpu.memory_space<vmem>>, vector<768x384xbf16>
    %cst = arith.constant dense<0.000000e+00> : vector<16x384xf32>
    %3 = tpu.matmul %1, %2, %cst {dimension_numbers = #tpu.dot_dimension_numbers<[1], [0], [0], [1], [0, 0, 1, 1], [], []>} : vector<16x768xbf16>, vector<768x384xbf16>, vector<16x384xf32> -> vector<16x384xf32>
    %4 = vector.extract_strided_slice %3 {offsets = [0, 128], sizes = [16, 128], strides = [1, 1]} : vector<16x384xf32> to vector<16x128xf32>
    %c0_4 = arith.constant 0 : index
    %c0_5 = arith.constant 0 : index
    %5 = vector.load %arg11[%c0_4, %c0_5] : memref<16x128xf32, #tpu.memory_space<vmem>>, vector<16x128xf32>
    tpu.vector_store %arg11[%c0_4, %c0_5], %4 {strides = array<i32>} : memref<16x128xf32, #tpu.memory_space<vmem>>, vector<16x128xf32>,
    %c2 = arith.constant 2 : index
    %c0_6 = arith.constant 0 : index
    %6 = vector.load %arg11[%c2, %c0_6] : memref<16x128xf32, #tpu.memory_space<vmem>>, vector<14x128xf32>
    %7 = vector.extract_strided_slice %3 {offsets = [0, 0], sizes = [14, 128], strides = [1, 1]} : vector<16x384xf32> to vector<14x128xf32>
    %8 = arith.addf %6, %7 : vector<14x128xf32>
    %c2_7 = arith.constant 2 : index
    %c0_8 = arith.constant 0 : index
    %9 = vector.load %arg11[%c2_7, %c0_8] : memref<16x128xf32, #tpu.memory_space<vmem>>, vector<14x128xf32>
    tpu.vector_store %arg11[%c2_7, %c0_8], %8 {strides = array<i32>} : memref<16x128xf32, #tpu.memory_space<vmem>>, vector<14x128xf32>,
    %c0_9 = arith.constant 0 : index
    %c0_10 = arith.constant 0 : index
    %10 = vector.load %arg11[%c0_9, %c0_10] : memref<16x128xf32, #tpu.memory_space<vmem>>, vector<14x128xf32>
    %11 = vector.extract_strided_slice %3 {offsets = [2, 256], sizes = [14, 128], strides = [1, 1]} : vector<16x384xf32> to vector<14x128xf32>
    %12 = arith.addf %10, %11 : vector<14x128xf32>
    %c0_11 = arith.constant 0 : index
    %c0_12 = arith.constant 0 : index
    %13 = vector.load %arg11[%c0_11, %c0_12] : memref<16x128xf32, #tpu.memory_space<vmem>>, vector<14x128xf32>
    tpu.vector_store %arg11[%c0_11, %c0_12], %12 {strides = array<i32>} : memref<16x128xf32, #tpu.memory_space<vmem>>, vector<14x128xf32>,
    %c0_13 = arith.constant 0 : index
    %c0_14 = arith.constant 0 : index
    %14 = vector.load %arg11[%c0_13, %c0_14] : memref<16x128xf32, #tpu.memory_space<vmem>>, vector<16x128xf32>
    %15 = arith.truncf %14 : vector<16x128xf32> to vector<16x128xbf16>
    %c0_15 = arith.constant 0 : index
    %c0_16 = arith.constant 0 : index
    %16 = vector.load %arg3[%c0_15, %c0_16] : memref<128x256xbf16, #tpu.memory_space<vmem>>, vector<128x256xbf16>
    %cst_17 = arith.constant dense<0.000000e+00> : vector<16x256xf32>
    %17 = tpu.matmul %15, %16, %cst_17 {dimension_numbers = #tpu.dot_dimension_numbers<[1], [0], [0], [1], [0, 0, 1, 1], [], []>} : vector<16x128xbf16>, vector<128x256xbf16>, vector<16x256xf32> -> vector<16x256xf32>
    %c0_18 = arith.constant 0 : index
    %c0_19 = arith.constant 0 : index
    %18 = vector.load %arg5[%c0_18, %c0_19] : memref<1x256xf32, #tpu.memory_space<vmem>>, vector<1x256xf32>
    %19 = vector.broadcast %18 : vector<1x256xf32> to vector<16x256xf32>
    %20 = arith.addf %17, %19 : vector<16x256xf32>
    %21 = vector.shape_cast %20 : vector<16x256xf32> to vector<8x2x256xf32>
    %c0_20 = arith.constant 0 : index
    %c0_21 = arith.constant 0 : index
    %c0_22 = arith.constant 0 : index
    %22 = vector.load %arg12[%c0_20, %c0_21, %c0_22] : memref<8x2x256xf32, #tpu.memory_space<vmem>>, vector<8x2x256xf32>
    tpu.vector_store %arg12[%c0_20, %c0_21, %c0_22], %21 {strides = array<i32>} : memref<8x2x256xf32, #tpu.memory_space<vmem>>, vector<8x2x256xf32>,
    %c0_23 = arith.constant 0 : index
    %c0_24 = arith.constant 0 : index
    %23 = vector.load %arg4[%c0_23, %c0_24] : memref<64x256xbf16, #tpu.memory_space<vmem>>, vector<64x256xbf16>
    %cst_25 = arith.constant 0.000000e+00 : bf16
    %24 = vector.broadcast %cst_25 : bf16 to vector<2x64xbf16>
    %cst_26 = arith.constant 0.000000e+00 : f32
    %25 = vector.broadcast %cst_26 : f32 to vector<2x64xf32>
    %c0_i32 = arith.constant 0 : i32
    %26 = arith.index_cast %c0_i32 : i32 to index
    %c0_27 = arith.constant 0 : index
    %c0_28 = arith.constant 0 : index
    %27 = vector.load %arg12[%26, %c0_27, %c0_28] : memref<8x2x256xf32, #tpu.memory_space<vmem>>, vector<1x2x256xf32>
    %28 = vector.shape_cast %27 : vector<1x2x256xf32> to vector<2x256xf32>
    %cst_29 = arith.constant dense<0.000000e+00> : vector<2x256xf32>
    %29 = tpu.matmul %24, %23, %cst_29 {dimension_numbers = #tpu.dot_dimension_numbers<[1], [0], [0], [1], [0, 0, 1, 1], [], []>} : vector<2x64xbf16>, vector<64x256xbf16>, vector<2x256xf32> -> vector<2x256xf32>
    %30 = arith.addf %28, %29 : vector<2x256xf32>
    %31 = vector.extract_strided_slice %30 {offsets = [0, 0], sizes = [2, 128], strides = [1, 1]} : vector<2x256xf32> to vector<2x128xf32>
    %32 = arith.negf %31 : vector<2x128xf32>
    %33 = math.exp %32 : vector<2x128xf32>
    %cst_30 = arith.constant 1.000000e+00 : f32
    %34 = vector.broadcast %cst_30 : f32 to vector<2x128xf32>
    %35 = arith.addf %34, %33 : vector<2x128xf32>
    %36 = arith.divf %34, %35 : vector<2x128xf32>
    %37 = vector.extract_strided_slice %30 {offsets = [0, 128], sizes = [2, 64], strides = [1, 1]} : vector<2x256xf32> to vector<2x64xf32>
    %38 = math.tanh %37 : vector<2x64xf32>
    %39 = vector.extract_strided_slice %30 {offsets = [0, 192], sizes = [2, 64], strides = [1, 1]} : vector<2x256xf32> to vector<2x64xf32>
    %40 = arith.negf %39 : vector<2x64xf32>
    %41 = math.exp %40 : vector<2x64xf32>
    %cst_31 = arith.constant 1.000000e+00 : f32
    %42 = vector.broadcast %cst_31 : f32 to vector<2x64xf32>
    %43 = arith.addf %42, %41 : vector<2x64xf32>
    %44 = arith.divf %42, %43 : vector<2x64xf32>
    %45 = vector.extract_strided_slice %36 {offsets = [0, 64], sizes = [2, 64], strides = [1, 1]} : vector<2x128xf32> to vector<2x64xf32>
    %46 = arith.mulf %45, %25 : vector<2x64xf32>
    %47 = vector.extract_strided_slice %36 {offsets = [0, 0], sizes = [2, 64], strides = [1, 1]} : vector<2x128xf32> to vector<2x64xf32>
    %48 = arith.mulf %47, %38 : vector<2x64xf32>
    %49 = arith.addf %46, %48 : vector<2x64xf32>
    %50 = math.tanh %49 : vector<2x64xf32>
    %51 = arith.mulf %44, %50 : vector<2x64xf32>
    %52 = arith.truncf %51 : vector<2x64xf32> to vector<2x64xbf16>
    %c1_i32 = arith.constant 1 : i32
    %53 = arith.index_cast %c1_i32 : i32 to index
    %c0_32 = arith.constant 0 : index
    %c0_33 = arith.constant 0 : index
    %54 = vector.load %arg12[%53, %c0_32, %c0_33] : memref<8x2x256xf32, #tpu.memory_space<vmem>>, vector<1x2x256xf32>
    %55 = vector.shape_cast %54 : vector<1x2x256xf32> to vector<2x256xf32>
    %cst_34 = arith.constant dense<0.000000e+00> : vector<2x256xf32>
    %56 = tpu.matmul %52, %23, %cst_34 {dimension_numbers = #tpu.dot_dimension_numbers<[1], [0], [0], [1], [0, 0, 1, 1], [], []>} : vector<2x64xbf16>, vector<64x256xbf16>, vector<2x256xf32> -> vector<2x256xf32>
    %57 = arith.addf %55, %56 : vector<2x256xf32>
    %58 = vector.extract_strided_slice %57 {offsets = [0, 0], sizes = [2, 128], strides = [1, 1]} : vector<2x256xf32> to vector<2x128xf32>
    %59 = arith.negf %58 : vector<2x128xf32>
    %60 = math.exp %59 : vector<2x128xf32>
    %cst_35 = arith.constant 1.000000e+00 : f32
    %61 = vector.broadcast %cst_35 : f32 to vector<2x128xf32>
    %62 = arith.addf %61, %60 : vector<2x128xf32>
    %63 = arith.divf %61, %62 : vector<2x128xf32>
    %64 = vector.extract_strided_slice %57 {offsets = [0, 128], sizes = [2, 64], strides = [1, 1]} : vector<2x256xf32> to vector<2x64xf32>
    %65 = math.tanh %64 : vector<2x64xf32>
    %66 = vector.extract_strided_slice %57 {offsets = [0, 192], sizes = [2, 64], strides = [1, 1]} : vector<2x256xf32> to vector<2x64xf32>
    %67 = arith.negf %66 : vector<2x64xf32>
    %68 = math.exp %67 : vector<2x64xf32>
    %cst_36 = arith.constant 1.000000e+00 : f32
    %69 = vector.broadcast %cst_36 : f32 to vector<2x64xf32>
    %70 = arith.addf %69, %68 : vector<2x64xf32>
    %71 = arith.divf %69, %70 : vector<2x64xf32>
    %72 = vector.extract_strided_slice %63 {offsets = [0, 64], sizes = [2, 64], strides = [1, 1]} : vector<2x128xf32> to vector<2x64xf32>
    %73 = arith.mulf %72, %49 : vector<2x64xf32>
    %74 = vector.extract_strided_slice %63 {offsets = [0, 0], sizes = [2, 64], strides = [1, 1]} : vector<2x128xf32> to vector<2x64xf32>
    %75 = arith.mulf %74, %65 : vector<2x64xf32>
    %76 = arith.addf %73, %75 : vector<2x64xf32>
    %77 = math.tanh %76 : vector<2x64xf32>
    %78 = arith.mulf %71, %77 : vector<2x64xf32>
    %79 = arith.truncf %78 : vector<2x64xf32> to vector<2x64xbf16>
    %c2_i32 = arith.constant 2 : i32
    %80 = arith.index_cast %c2_i32 : i32 to index
    %c0_37 = arith.constant 0 : index
    %c0_38 = arith.constant 0 : index
    %81 = vector.load %arg12[%80, %c0_37, %c0_38] : memref<8x2x256xf32, #tpu.memory_space<vmem>>, vector<1x2x256xf32>
    %82 = vector.shape_cast %81 : vector<1x2x256xf32> to vector<2x256xf32>
    %cst_39 = arith.constant dense<0.000000e+00> : vector<2x256xf32>
    %83 = tpu.matmul %79, %23, %cst_39 {dimension_numbers = #tpu.dot_dimension_numbers<[1], [0], [0], [1], [0, 0, 1, 1], [], []>} : vector<2x64xbf16>, vector<64x256xbf16>, vector<2x256xf32> -> vector<2x256xf32>
    %84 = arith.addf %82, %83 : vector<2x256xf32>
    %85 = vector.extract_strided_slice %84 {offsets = [0, 0], sizes = [2, 128], strides = [1, 1]} : vector<2x256xf32> to vector<2x128xf32>
    %86 = arith.negf %85 : vector<2x128xf32>
    %87 = math.exp %86 : vector<2x128xf32>
    %cst_40 = arith.constant 1.000000e+00 : f32
    %88 = vector.broadcast %cst_40 : f32 to vector<2x128xf32>
    %89 = arith.addf %88, %87 : vector<2x128xf32>
    %90 = arith.divf %88, %89 : vector<2x128xf32>
    %91 = vector.extract_strided_slice %84 {offsets = [0, 128], sizes = [2, 64], strides = [1, 1]} : vector<2x256xf32> to vector<2x64xf32>
    %92 = math.tanh %91 : vector<2x64xf32>
    %93 = vector.extract_strided_slice %84 {offsets = [0, 192], sizes = [2, 64], strides = [1, 1]} : vector<2x256xf32> to vector<2x64xf32>
    %94 = arith.negf %93 : vector<2x64xf32>
    %95 = math.exp %94 : vector<2x64xf32>
    %cst_41 = arith.constant 1.000000e+00 : f32
    %96 = vector.broadcast %cst_41 : f32 to vector<2x64xf32>
    %97 = arith.addf %96, %95 : vector<2x64xf32>
    %98 = arith.divf %96, %97 : vector<2x64xf32>
    %99 = vector.extract_strided_slice %90 {offsets = [0, 64], sizes = [2, 64], strides = [1, 1]} : vector<2x128xf32> to vector<2x64xf32>
    %100 = arith.mulf %99, %76 : vector<2x64xf32>
    %101 = vector.extract_strided_slice %90 {offsets = [0, 0], sizes = [2, 64], strides = [1, 1]} : vector<2x128xf32> to vector<2x64xf32>
    %102 = arith.mulf %101, %92 : vector<2x64xf32>
    %103 = arith.addf %100, %102 : vector<2x64xf32>
    %104 = math.tanh %103 : vector<2x64xf32>
    %105 = arith.mulf %98, %104 : vector<2x64xf32>
    %106 = arith.truncf %105 : vector<2x64xf32> to vector<2x64xbf16>
    %c3_i32 = arith.constant 3 : i32
    %107 = arith.index_cast %c3_i32 : i32 to index
    %c0_42 = arith.constant 0 : index
    %c0_43 = arith.constant 0 : index
    %108 = vector.load %arg12[%107, %c0_42, %c0_43] : memref<8x2x256xf32, #tpu.memory_space<vmem>>, vector<1x2x256xf32>
    %109 = vector.shape_cast %108 : vector<1x2x256xf32> to vector<2x256xf32>
    %cst_44 = arith.constant dense<0.000000e+00> : vector<2x256xf32>
    %110 = tpu.matmul %106, %23, %cst_44 {dimension_numbers = #tpu.dot_dimension_numbers<[1], [0], [0], [1], [0, 0, 1, 1], [], []>} : vector<2x64xbf16>, vector<64x256xbf16>, vector<2x256xf32> -> vector<2x256xf32>
    %111 = arith.addf %109, %110 : vector<2x256xf32>
    %112 = vector.extract_strided_slice %111 {offsets = [0, 0], sizes = [2, 128], strides = [1, 1]} : vector<2x256xf32> to vector<2x128xf32>
    %113 = arith.negf %112 : vector<2x128xf32>
    %114 = math.exp %113 : vector<2x128xf32>
    %cst_45 = arith.constant 1.000000e+00 : f32
    %115 = vector.broadcast %cst_45 : f32 to vector<2x128xf32>
    %116 = arith.addf %115, %114 : vector<2x128xf32>
    %117 = arith.divf %115, %116 : vector<2x128xf32>
    %118 = vector.extract_strided_slice %111 {offsets = [0, 128], sizes = [2, 64], strides = [1, 1]} : vector<2x256xf32> to vector<2x64xf32>
    %119 = math.tanh %118 : vector<2x64xf32>
    %120 = vector.extract_strided_slice %111 {offsets = [0, 192], sizes = [2, 64], strides = [1, 1]} : vector<2x256xf32> to vector<2x64xf32>
    %121 = arith.negf %120 : vector<2x64xf32>
    %122 = math.exp %121 : vector<2x64xf32>
    %cst_46 = arith.constant 1.000000e+00 : f32
    %123 = vector.broadcast %cst_46 : f32 to vector<2x64xf32>
    %124 = arith.addf %123, %122 : vector<2x64xf32>
    %125 = arith.divf %123, %124 : vector<2x64xf32>
    %126 = vector.extract_strided_slice %117 {offsets = [0, 64], sizes = [2, 64], strides = [1, 1]} : vector<2x128xf32> to vector<2x64xf32>
    %127 = arith.mulf %126, %103 : vector<2x64xf32>
    %128 = vector.extract_strided_slice %117 {offsets = [0, 0], sizes = [2, 64], strides = [1, 1]} : vector<2x128xf32> to vector<2x64xf32>
    %129 = arith.mulf %128, %119 : vector<2x64xf32>
    %130 = arith.addf %127, %129 : vector<2x64xf32>
    %131 = math.tanh %130 : vector<2x64xf32>
    %132 = arith.mulf %125, %131 : vector<2x64xf32>
    %133 = arith.truncf %132 : vector<2x64xf32> to vector<2x64xbf16>
    %c4_i32 = arith.constant 4 : i32
    %134 = arith.index_cast %c4_i32 : i32 to index
    %c0_47 = arith.constant 0 : index
    %c0_48 = arith.constant 0 : index
    %135 = vector.load %arg12[%134, %c0_47, %c0_48] : memref<8x2x256xf32, #tpu.memory_space<vmem>>, vector<1x2x256xf32>
    %136 = vector.shape_cast %135 : vector<1x2x256xf32> to vector<2x256xf32>
    %cst_49 = arith.constant dense<0.000000e+00> : vector<2x256xf32>
    %137 = tpu.matmul %133, %23, %cst_49 {dimension_numbers = #tpu.dot_dimension_numbers<[1], [0], [0], [1], [0, 0, 1, 1], [], []>} : vector<2x64xbf16>, vector<64x256xbf16>, vector<2x256xf32> -> vector<2x256xf32>
    %138 = arith.addf %136, %137 : vector<2x256xf32>
    %139 = vector.extract_strided_slice %138 {offsets = [0, 0], sizes = [2, 128], strides = [1, 1]} : vector<2x256xf32> to vector<2x128xf32>
    %140 = arith.negf %139 : vector<2x128xf32>
    %141 = math.exp %140 : vector<2x128xf32>
    %cst_50 = arith.constant 1.000000e+00 : f32
    %142 = vector.broadcast %cst_50 : f32 to vector<2x128xf32>
    %143 = arith.addf %142, %141 : vector<2x128xf32>
    %144 = arith.divf %142, %143 : vector<2x128xf32>
    %145 = vector.extract_strided_slice %138 {offsets = [0, 128], sizes = [2, 64], strides = [1, 1]} : vector<2x256xf32> to vector<2x64xf32>
    %146 = math.tanh %145 : vector<2x64xf32>
    %147 = vector.extract_strided_slice %138 {offsets = [0, 192], sizes = [2, 64], strides = [1, 1]} : vector<2x256xf32> to vector<2x64xf32>
    %148 = arith.negf %147 : vector<2x64xf32>
    %149 = math.exp %148 : vector<2x64xf32>
    %cst_51 = arith.constant 1.000000e+00 : f32
    %150 = vector.broadcast %cst_51 : f32 to vector<2x64xf32>
    %151 = arith.addf %150, %149 : vector<2x64xf32>
    %152 = arith.divf %150, %151 : vector<2x64xf32>
    %153 = vector.extract_strided_slice %144 {offsets = [0, 64], sizes = [2, 64], strides = [1, 1]} : vector<2x128xf32> to vector<2x64xf32>
    %154 = arith.mulf %153, %130 : vector<2x64xf32>
    %155 = vector.extract_strided_slice %144 {offsets = [0, 0], sizes = [2, 64], strides = [1, 1]} : vector<2x128xf32> to vector<2x64xf32>
    %156 = arith.mulf %155, %146 : vector<2x64xf32>
    %157 = arith.addf %154, %156 : vector<2x64xf32>
    %158 = math.tanh %157 : vector<2x64xf32>
    %159 = arith.mulf %152, %158 : vector<2x64xf32>
    %160 = arith.truncf %159 : vector<2x64xf32> to vector<2x64xbf16>
    %c5_i32 = arith.constant 5 : i32
    %161 = arith.index_cast %c5_i32 : i32 to index
    %c0_52 = arith.constant 0 : index
    %c0_53 = arith.constant 0 : index
    %162 = vector.load %arg12[%161, %c0_52, %c0_53] : memref<8x2x256xf32, #tpu.memory_space<vmem>>, vector<1x2x256xf32>
    %163 = vector.shape_cast %162 : vector<1x2x256xf32> to vector<2x256xf32>
    %cst_54 = arith.constant dense<0.000000e+00> : vector<2x256xf32>
    %164 = tpu.matmul %160, %23, %cst_54 {dimension_numbers = #tpu.dot_dimension_numbers<[1], [0], [0], [1], [0, 0, 1, 1], [], []>} : vector<2x64xbf16>, vector<64x256xbf16>, vector<2x256xf32> -> vector<2x256xf32>
    %165 = arith.addf %163, %164 : vector<2x256xf32>
    %166 = vector.extract_strided_slice %165 {offsets = [0, 0], sizes = [2, 128], strides = [1, 1]} : vector<2x256xf32> to vector<2x128xf32>
    %167 = arith.negf %166 : vector<2x128xf32>
    %168 = math.exp %167 : vector<2x128xf32>
    %cst_55 = arith.constant 1.000000e+00 : f32
    %169 = vector.broadcast %cst_55 : f32 to vector<2x128xf32>
    %170 = arith.addf %169, %168 : vector<2x128xf32>
    %171 = arith.divf %169, %170 : vector<2x128xf32>
    %172 = vector.extract_strided_slice %165 {offsets = [0, 128], sizes = [2, 64], strides = [1, 1]} : vector<2x256xf32> to vector<2x64xf32>
    %173 = math.tanh %172 : vector<2x64xf32>
    %174 = vector.extract_strided_slice %165 {offsets = [0, 192], sizes = [2, 64], strides = [1, 1]} : vector<2x256xf32> to vector<2x64xf32>
    %175 = arith.negf %174 : vector<2x64xf32>
    %176 = math.exp %175 : vector<2x64xf32>
    %cst_56 = arith.constant 1.000000e+00 : f32
    %177 = vector.broadcast %cst_56 : f32 to vector<2x64xf32>
    %178 = arith.addf %177, %176 : vector<2x64xf32>
    %179 = arith.divf %177, %178 : vector<2x64xf32>
    %180 = vector.extract_strided_slice %171 {offsets = [0, 64], sizes = [2, 64], strides = [1, 1]} : vector<2x128xf32> to vector<2x64xf32>
    %181 = arith.mulf %180, %157 : vector<2x64xf32>
    %182 = vector.extract_strided_slice %171 {offsets = [0, 0], sizes = [2, 64], strides = [1, 1]} : vector<2x128xf32> to vector<2x64xf32>
    %183 = arith.mulf %182, %173 : vector<2x64xf32>
    %184 = arith.addf %181, %183 : vector<2x64xf32>
    %185 = math.tanh %184 : vector<2x64xf32>
    %186 = arith.mulf %179, %185 : vector<2x64xf32>
    %187 = arith.truncf %186 : vector<2x64xf32> to vector<2x64xbf16>
    %c6_i32 = arith.constant 6 : i32
    %188 = arith.index_cast %c6_i32 : i32 to index
    %c0_57 = arith.constant 0 : index
    %c0_58 = arith.constant 0 : index
    %189 = vector.load %arg12[%188, %c0_57, %c0_58] : memref<8x2x256xf32, #tpu.memory_space<vmem>>, vector<1x2x256xf32>
    %190 = vector.shape_cast %189 : vector<1x2x256xf32> to vector<2x256xf32>
    %cst_59 = arith.constant dense<0.000000e+00> : vector<2x256xf32>
    %191 = tpu.matmul %187, %23, %cst_59 {dimension_numbers = #tpu.dot_dimension_numbers<[1], [0], [0], [1], [0, 0, 1, 1], [], []>} : vector<2x64xbf16>, vector<64x256xbf16>, vector<2x256xf32> -> vector<2x256xf32>
    %192 = arith.addf %190, %191 : vector<2x256xf32>
    %193 = vector.extract_strided_slice %192 {offsets = [0, 0], sizes = [2, 128], strides = [1, 1]} : vector<2x256xf32> to vector<2x128xf32>
    %194 = arith.negf %193 : vector<2x128xf32>
    %195 = math.exp %194 : vector<2x128xf32>
    %cst_60 = arith.constant 1.000000e+00 : f32
    %196 = vector.broadcast %cst_60 : f32 to vector<2x128xf32>
    %197 = arith.addf %196, %195 : vector<2x128xf32>
    %198 = arith.divf %196, %197 : vector<2x128xf32>
    %199 = vector.extract_strided_slice %192 {offsets = [0, 128], sizes = [2, 64], strides = [1, 1]} : vector<2x256xf32> to vector<2x64xf32>
    %200 = math.tanh %199 : vector<2x64xf32>
    %201 = vector.extract_strided_slice %192 {offsets = [0, 192], sizes = [2, 64], strides = [1, 1]} : vector<2x256xf32> to vector<2x64xf32>
    %202 = arith.negf %201 : vector<2x64xf32>
    %203 = math.exp %202 : vector<2x64xf32>
    %cst_61 = arith.constant 1.000000e+00 : f32
    %204 = vector.broadcast %cst_61 : f32 to vector<2x64xf32>
    %205 = arith.addf %204, %203 : vector<2x64xf32>
    %206 = arith.divf %204, %205 : vector<2x64xf32>
    %207 = vector.extract_strided_slice %198 {offsets = [0, 64], sizes = [2, 64], strides = [1, 1]} : vector<2x128xf32> to vector<2x64xf32>
    %208 = arith.mulf %207, %184 : vector<2x64xf32>
    %209 = vector.extract_strided_slice %198 {offsets = [0, 0], sizes = [2, 64], strides = [1, 1]} : vector<2x128xf32> to vector<2x64xf32>
    %210 = arith.mulf %209, %200 : vector<2x64xf32>
    %211 = arith.addf %208, %210 : vector<2x64xf32>
    %212 = math.tanh %211 : vector<2x64xf32>
    %213 = arith.mulf %206, %212 : vector<2x64xf32>
    %214 = arith.truncf %213 : vector<2x64xf32> to vector<2x64xbf16>
    %c7_i32 = arith.constant 7 : i32
    %215 = arith.index_cast %c7_i32 : i32 to index
    %c0_62 = arith.constant 0 : index
    %c0_63 = arith.constant 0 : index
    %216 = vector.load %arg12[%215, %c0_62, %c0_63] : memref<8x2x256xf32, #tpu.memory_space<vmem>>, vector<1x2x256xf32>
    %217 = vector.shape_cast %216 : vector<1x2x256xf32> to vector<2x256xf32>
    %cst_64 = arith.constant dense<0.000000e+00> : vector<2x256xf32>
    %218 = tpu.matmul %214, %23, %cst_64 {dimension_numbers = #tpu.dot_dimension_numbers<[1], [0], [0], [1], [0, 0, 1, 1], [], []>} : vector<2x64xbf16>, vector<64x256xbf16>, vector<2x256xf32> -> vector<2x256xf32>
    %219 = arith.addf %217, %218 : vector<2x256xf32>
    %220 = vector.extract_strided_slice %219 {offsets = [0, 0], sizes = [2, 128], strides = [1, 1]} : vector<2x256xf32> to vector<2x128xf32>
    %221 = arith.negf %220 : vector<2x128xf32>
    %222 = math.exp %221 : vector<2x128xf32>
    %cst_65 = arith.constant 1.000000e+00 : f32
    %223 = vector.broadcast %cst_65 : f32 to vector<2x128xf32>
    %224 = arith.addf %223, %222 : vector<2x128xf32>
    %225 = arith.divf %223, %224 : vector<2x128xf32>
    %226 = vector.extract_strided_slice %219 {offsets = [0, 128], sizes = [2, 64], strides = [1, 1]} : vector<2x256xf32> to vector<2x64xf32>
    %227 = math.tanh %226 : vector<2x64xf32>
    %228 = vector.extract_strided_slice %219 {offsets = [0, 192], sizes = [2, 64], strides = [1, 1]} : vector<2x256xf32> to vector<2x64xf32>
    %229 = arith.negf %228 : vector<2x64xf32>
    %230 = math.exp %229 : vector<2x64xf32>
    %cst_66 = arith.constant 1.000000e+00 : f32
    %231 = vector.broadcast %cst_66 : f32 to vector<2x64xf32>
    %232 = arith.addf %231, %230 : vector<2x64xf32>
    %233 = arith.divf %231, %232 : vector<2x64xf32>
    %234 = vector.extract_strided_slice %225 {offsets = [0, 64], sizes = [2, 64], strides = [1, 1]} : vector<2x128xf32> to vector<2x64xf32>
    %235 = arith.mulf %234, %211 : vector<2x64xf32>
    %236 = vector.extract_strided_slice %225 {offsets = [0, 0], sizes = [2, 64], strides = [1, 1]} : vector<2x128xf32> to vector<2x64xf32>
    %237 = arith.mulf %236, %227 : vector<2x64xf32>
    %238 = arith.addf %235, %237 : vector<2x64xf32>
    %239 = math.tanh %238 : vector<2x64xf32>
    %240 = arith.mulf %233, %239 : vector<2x64xf32>
    %241 = arith.truncf %240 : vector<2x64xf32> to vector<2x64xbf16>
    %c8_i32 = arith.constant 8 : i32
    %c14 = arith.constant 14 : index
    %c0_67 = arith.constant 0 : index
    %242 = vector.load %arg11[%c14, %c0_67] : memref<16x128xf32, #tpu.memory_space<vmem>>, vector<2x128xf32>
    %243 = arith.truncf %242 : vector<2x128xf32> to vector<2x128xbf16>
    %c0_68 = arith.constant 0 : index
    %c0_69 = arith.constant 0 : index
    %244 = vector.load %arg6[%c0_68, %c0_69] : memref<128x256xbf16, #tpu.memory_space<vmem>>, vector<128x256xbf16>
    %cst_70 = arith.constant dense<0.000000e+00> : vector<2x256xf32>
    %245 = tpu.matmul %243, %244, %cst_70 {dimension_numbers = #tpu.dot_dimension_numbers<[1], [0], [0], [1], [0, 0, 1, 1], [], []>} : vector<2x128xbf16>, vector<128x256xbf16>, vector<2x256xf32> -> vector<2x256xf32>
    %c0_71 = arith.constant 0 : index
    %c0_72 = arith.constant 0 : index
    %246 = vector.load %arg7[%c0_71, %c0_72] : memref<1x256xf32, #tpu.memory_space<vmem>>, vector<1x256xf32>
    %247 = vector.broadcast %246 : vector<1x256xf32> to vector<2x256xf32>
    %248 = arith.addf %245, %247 : vector<2x256xf32>
    %249 = vector.extract_strided_slice %248 {offsets = [0, 0], sizes = [2, 128], strides = [1, 1]} : vector<2x256xf32> to vector<2x128xf32>
    %250 = arith.negf %249 : vector<2x128xf32>
    %251 = math.exp %250 : vector<2x128xf32>
    %cst_73 = arith.constant 1.000000e+00 : f32
    %252 = vector.broadcast %cst_73 : f32 to vector<2x128xf32>
    %253 = arith.addf %252, %251 : vector<2x128xf32>
    %254 = arith.divf %252, %253 : vector<2x128xf32>
    %255 = vector.extract_strided_slice %248 {offsets = [0, 128], sizes = [2, 64], strides = [1, 1]} : vector<2x256xf32> to vector<2x64xf32>
    %256 = math.tanh %255 : vector<2x64xf32>
    %257 = vector.extract_strided_slice %248 {offsets = [0, 192], sizes = [2, 64], strides = [1, 1]} : vector<2x256xf32> to vector<2x64xf32>
    %258 = arith.negf %257 : vector<2x64xf32>
    %259 = math.exp %258 : vector<2x64xf32>
    %cst_74 = arith.constant 1.000000e+00 : f32
    %260 = vector.broadcast %cst_74 : f32 to vector<2x64xf32>
    %261 = arith.addf %260, %259 : vector<2x64xf32>
    %262 = arith.divf %260, %261 : vector<2x64xf32>
    %263 = vector.extract_strided_slice %254 {offsets = [0, 64], sizes = [2, 64], strides = [1, 1]} : vector<2x128xf32> to vector<2x64xf32>
    %264 = arith.mulf %263, %25 : vector<2x64xf32>
    %265 = vector.extract_strided_slice %254 {offsets = [0, 0], sizes = [2, 64], strides = [1, 1]} : vector<2x128xf32> to vector<2x64xf32>
    %266 = arith.mulf %265, %256 : vector<2x64xf32>
    %267 = arith.addf %264, %266 : vector<2x64xf32>
    %268 = math.tanh %267 : vector<2x64xf32>
    %269 = arith.mulf %262, %268 : vector<2x64xf32>
    %270 = arith.extf %241 : vector<2x64xbf16> to vector<2x64xf32>
    %271 = tpu.concatenate %270, %269 in 1 : vector<2x64xf32>, vector<2x64xf32> -> vector<2x128xf32>
    %c0_75 = arith.constant 0 : index
    %c0_76 = arith.constant 0 : index
    %272 = vector.load %arg8[%c0_75, %c0_76] : memref<128x128xf32, #tpu.memory_space<vmem>>, vector<128x128xf32>
    %cst_77 = arith.constant dense<0.000000e+00> : vector<2x128xf32>
    %273 = tpu.matmul %271, %272, %cst_77 {dimension_numbers = #tpu.dot_dimension_numbers<[1], [0], [0], [1], [0, 0, 1, 1], [], []>} : vector<2x128xf32>, vector<128x128xf32>, vector<2x128xf32> -> vector<2x128xf32>
    %c0_78 = arith.constant 0 : index
    %c0_79 = arith.constant 0 : index
    %274 = vector.load %arg9[%c0_78, %c0_79] : memref<1x128xf32, #tpu.memory_space<vmem>>, vector<1x128xf32>
    %275 = vector.broadcast %274 : vector<1x128xf32> to vector<2x128xf32>
    %276 = arith.addf %273, %275 : vector<2x128xf32>
    %c0_80 = arith.constant 0 : index
    %c0_81 = arith.constant 0 : index
    %c0_82 = arith.constant 0 : index
    %277 = vector.load %arg10[%c0_80, %c0_81, %c0_82] : memref<1x2x128xf32, #tpu.memory_space<vmem>>, vector<1x2x128xf32>
    %278 = vector.shape_cast %277 : vector<1x2x128xf32> to vector<2x128xf32>
    %279 = vector.shape_cast %276 : vector<2x128xf32> to vector<1x2x128xf32>
    tpu.vector_store %arg10[%c0_80, %c0_81, %c0_82], %279 {strides = array<i32>} : memref<1x2x128xf32, #tpu.memory_space<vmem>>, vector<1x2x128xf32>,
    return
  }
  func.func @transform_0(%arg0: i32) -> (i32, i32, i32) {
    %c0_i32 = arith.constant 0 : i32
    %c0_i32_0 = arith.constant 0 : i32
    %c0_i32_1 = arith.constant 0 : i32
    return %c0_i32, %arg0, %c0_i32_0 : i32, i32, i32
  }
  func.func @transform_1(%arg0: i32) -> (i32, i32) {
    %c0_i32 = arith.constant 0 : i32
    %c0_i32_0 = arith.constant 0 : i32
    %c0_i32_1 = arith.constant 0 : i32
    return %c0_i32, %c0_i32_0 : i32, i32
  }
  func.func @transform_2(%arg0: i32) -> (i32, i32) {
    %c0_i32 = arith.constant 0 : i32
    %c0_i32_0 = arith.constant 0 : i32
    %c0_i32_1 = arith.constant 0 : i32
    return %c0_i32, %c0_i32_0 : i32, i32
  }
  func.func @transform_3(%arg0: i32) -> (i32, i32) {
    %c0_i32 = arith.constant 0 : i32
    %c0_i32_0 = arith.constant 0 : i32
    %c0_i32_1 = arith.constant 0 : i32
    return %c0_i32, %c0_i32_0 : i32, i32
  }
  func.func @transform_4(%arg0: i32) -> (i32, i32) {
    %c0_i32 = arith.constant 0 : i32
    %c0_i32_0 = arith.constant 0 : i32
    %c0_i32_1 = arith.constant 0 : i32
    return %c0_i32, %c0_i32_0 : i32, i32
  }
  func.func @transform_5(%arg0: i32) -> (i32, i32) {
    %c0_i32 = arith.constant 0 : i32
    %c0_i32_0 = arith.constant 0 : i32
    %c0_i32_1 = arith.constant 0 : i32
    return %c0_i32, %c0_i32_0 : i32, i32
  }
  func.func @transform_6(%arg0: i32) -> (i32, i32) {
    %c0_i32 = arith.constant 0 : i32
    %c0_i32_0 = arith.constant 0 : i32
    %c0_i32_1 = arith.constant 0 : i32
    return %c0_i32, %c0_i32_0 : i32, i32
  }
  func.func @transform_7(%arg0: i32) -> (i32, i32) {
    %c0_i32 = arith.constant 0 : i32
    %c0_i32_0 = arith.constant 0 : i32
    %c0_i32_1 = arith.constant 0 : i32
    return %c0_i32, %c0_i32_0 : i32, i32
  }
  func.func @transform_8(%arg0: i32) -> (i32, i32) {
    %c0_i32 = arith.constant 0 : i32
    %c0_i32_0 = arith.constant 0 : i32
    %c0_i32_1 = arith.constant 0 : i32
    return %c0_i32, %c0_i32_0 : i32, i32
  }
  func.func @transform_9(%arg0: i32) -> (i32, i32, i32) {
    %c0_i32 = arith.constant 0 : i32
    %c0_i32_0 = arith.constant 0 : i32
    %c0_i32_1 = arith.constant 0 : i32
    return %arg0, %c0_i32, %c0_i32_0 : i32, i32, i32
  }
}

</mosaic_0001>

<bundles_post_ra>
// kernel: tpu_custom_call.1
= control target key start
LH: loop header
LB: loop body
LE: loop exit
PB: predicated region body
PF: predicated region fallthrough
CT: control target
= control target key end

     0   :  { %14 = vsyncpa [#allocation5], 0  ;;  %s3989_s0 = inlined_call_operand.hbm [shape: bf16[8,2,768], index: 0, kind: input, shape index: {}]   ;;  %s3990_s1 = inlined_call_operand.hbm [shape: bf16[768,384], index: 1, kind: input, shape index: {}]   ;;  %s3991_s2 = inlined_call_operand.hbm [shape: bf16[128,256], index: 2, kind: input, shape index: {}]   ;;  %s3992_s3 = inlined_call_operand.hbm [shape: bf16[64,256], index: 3, kind: input, shape index: {}]   ;;  %s3993_s4 = inlined_call_operand.vmem [shape: f32[1,256], index: 4, kind: input, shape index: {}]   ;;  %s3994_s5 = inlined_call_operand.hbm [shape: bf16[128,256], index: 5, kind: input, shape index: {}]   ;;  %s3995_s6 = inlined_call_operand.vmem [shape: f32[1,256], index: 6, kind: input, shape index: {}]   ;;  %s3996_s7 = inlined_call_operand.hbm [shape: f32[128,128], index: 7, kind: input, shape index: {}]   ;;  %s3997_s8 = inlined_call_operand.vmem [shape: f32[1,128], index: 8, kind: input, shape index: {}]   ;;  %s3998_s9 = inlined_call_operand.hbm [shape: f32[1,2,128], index: 9, kind: output, shape index: {}]  }
   0x1   :  { %15 = vsyncpa [#allocation8], 0 }
   0x2   :  { %16 = vsyncpa [#allocation11], 0 }
   0x3   :  { %17 = vsyncpa [#allocation14], 0 }
   0x4   :  { %18 = vsyncpa [#allocation6], 0  ;;  %s3660_s30 = smov [#allocation7]  }
   0x5   :  { %s36_s10 = sshll.u32 %s3660_s30, 4  ;;  %s37_s10 = int_to_ptr.vmem [resolvable:$true] %s36_s10 }
   0x6   :  { %s3518_s11 = scalar_lea.vmem %s37_s10, 18432  ;;  %p3523_p1 = scmp.lt.s32.totalorder %s37_s10, %s37_s10 }
   0x7   :  { %p3519_p0 = scmp.ne.s32.totalorder %s37_s10, %s3518_s11  ;;  %p3524_p2 = scmp.lt.s32.totalorder %s3518_s11, %s3518_s11 }
   0x9   :  { %p3525_p3 = por %p3524_p2, %p3523_p1 }
   0xb   :  { %p3526_p4 = pnand %p3525_p3, %p3519_p0 }
   0xd   :  { %3529 = shalt.err (!%p3526_p4)
}
   0xe   :  { %s3661_s12 = smov 192   ;;  %s3662_s13 = smov 12  }
   0xf   :  { %42 = dma.hbm_to_vmem [thread:$0]  %s3990_s1, 18432, %s37_s10, [#allocation8], %s3661_s12, %s3661_s12, %s3662_s13  }
  0x10   :  { %s3663_s16 = smov [#allocation10]   ;;  %s3664_s18 = smov [#allocation4]  }
  0x11   :  { %s60_s17 = sshll.u32 %s3663_s16, 4  ;;  %s24_s19 = sshll.u32 %s3664_s18, 4  ;;  %s61_s17 = int_to_ptr.vmem [resolvable:$true] %s60_s17  ;;  %s25_s19 = int_to_ptr.vmem [resolvable:$true] %s24_s19 }
  0x12   :  { %s3538_s20 = scalar_lea.vmem %s61_s17, 1024  ;;  %p3543_p6 = scmp.lt.s32.totalorder %s61_s17, %s61_s17 }
  0x13   :  { %p3539_p5 = scmp.ne.s32.totalorder %s61_s17, %s3538_s20  ;;  %p3544_p7 = scmp.lt.s32.totalorder %s3538_s20, %s3538_s20 }
  0x15   :  { %p3545_p8 = por %p3544_p7, %p3543_p6 }
  0x17   :  { %p3546_p9 = pnand %p3545_p8, %p3539_p5 }
  0x19   :  { %3549 = shalt.err (!%p3546_p9)
}
  0x1a   :  { %s3665_s21 = smov 128   ;;  %s3666_s22 = smov 8  }
  0x1b   :  { %66 = dma.hbm_to_vmem [thread:$0]  %s3992_s3, 1024, %s61_s17, [#allocation11], %s3665_s21, %s3665_s21, %s3666_s22  }
  0x1c   :  { %s3558_s1 = scalar_lea.vmem %s25_s19, 768  ;;  %p3563_p11 = scmp.lt.s32.totalorder %s25_s19, %s25_s19 }
  0x1d   :  { %p3559_p10 = scmp.ne.s32.totalorder %s25_s19, %s3558_s1  ;;  %p3564_p12 = scmp.lt.s32.totalorder %s3558_s1, %s3558_s1 }
  0x1f   :  { %p3565_p13 = por %p3564_p12, %p3563_p11 }
  0x21   :  { %p3566_p0 = pnand %p3565_p13, %p3559_p10 }
  0x23   :  { %3569 = shalt.err (!%p3566_p0)
}
  0x24   :  { %s3667_s25 = smov 96   ;;  %s3668_s26 = smov 6  }
  0x25   :  { %30 = dma.hbm_to_vmem [thread:$0]  %s3989_s0, 768, %s25_s19, [#allocation5], %s3667_s25, %s3667_s25, %s3668_s26  }
  0x26   :  { %s3669_s29 = smov [#allocation9]   ;;  %s3670_s10 = smov [#allocation12]  }
  0x27   :  { %s48_s30 = sshll.u32 %s3669_s29, 4  ;;  %s74_s11 = sshll.u32 %s3670_s10, 4  ;;  %s49_s30 = int_to_ptr.vmem [resolvable:$true] %s48_s30  ;;  %s75_s11 = int_to_ptr.vmem [resolvable:$true] %s74_s11 }
  0x28   :  { %s3578_s3 = scalar_lea.vmem %s49_s30, 2048  ;;  %p3583_p2 = scmp.lt.s32.totalorder %s49_s30, %s49_s30 }
  0x29   :  { %p3579_p1 = scmp.ne.s32.totalorder %s49_s30, %s3578_s3  ;;  %p3584_p3 = scmp.lt.s32.totalorder %s3578_s3, %s3578_s3 }
  0x2b   :  { %p3585_p4 = por %p3584_p3, %p3583_p2 }
  0x2d   :  { %p3586_p5 = pnand %p3585_p4, %p3579_p1 }
  0x2f   :  { %3589 = shalt.err (!%p3586_p5)
}
  0x30   :  { %54 = dma.hbm_to_vmem [thread:$0]  %s3991_s2, 2048, %s49_s30, [#allocation8], %s3665_s21, %s3665_s21, %s3666_s22  }
  0x31   :  { %s3598_s0 = scalar_lea.vmem %s75_s11, 2048  ;;  %p3603_p7 = scmp.lt.s32.totalorder %s75_s11, %s75_s11 }
  0x32   :  { %p3599_p6 = scmp.ne.s32.totalorder %s75_s11, %s3598_s0  ;;  %p3604_p8 = scmp.lt.s32.totalorder %s3598_s0, %s3598_s0 }
  0x34   :  { %p3605_p9 = por %p3604_p8, %p3603_p7 }
  0x36   :  { %p3606_p10 = pnand %p3605_p9, %p3599_p6 }
  0x38   :  { %3609 = shalt.err (!%p3606_p10)
}
  0x39   :  { %80 = dma.hbm_to_vmem [thread:$0]  %s3994_s5, 2048, %s75_s11, [#allocation11], %s3665_s21, %s3665_s21, %s3666_s22  }
  0x3a   :  { %s3671_s16 = smov [#allocation13]  }
  0x3b   :  { %s88_s17 = sshll.u32 %s3671_s16, 4  ;;  %s89_s17 = int_to_ptr.vmem [resolvable:$true] %s88_s17 }
  0x3c   :  { %s3618_s18 = scalar_lea.vmem %s89_s17, 2048  ;;  %p3623_p12 = scmp.lt.s32.totalorder %s89_s17, %s89_s17 }
  0x3d   :  { %p3619_p11 = scmp.ne.s32.totalorder %s89_s17, %s3618_s18  ;;  %p3624_p13 = scmp.lt.s32.totalorder %s3618_s18, %s3618_s18 }
  0x3f   :  { %p3625_p0 = por %p3624_p13, %p3623_p12 }
  0x41   :  { %p3626_p1 = pnand %p3625_p0, %p3619_p11 }
  0x43   :  { %3629 = shalt.err (!%p3626_p1)
}
  0x44   :  { %94 = dma.hbm_to_vmem [thread:$0]  %s3996_s7, 2048, %s89_s17, [#allocation14], %s3665_s21, %s3665_s21, %s3666_s22  }
  0x45   :  { %3650 = dma.done.wait [#allocation5], 768  }
  0x46   :  { %3651 = vsyncadd [#allocation5], 4294966528 }
  0x47   :  { %3652 = dma.done.wait [#allocation8], 20480  }
  0x48   :  { %3653 = vsyncadd [#allocation8], 4294946816 }
  0x49   :  { %3654 = dma.done.wait [#allocation11], 3072  }
  0x4a   :  { %3655 = vsyncadd [#allocation11], 4294964224 }
  0x4b   :  { %3656 = dma.done.wait [#allocation14], 2048  }
  0x4c   :  { %3657 = vsyncadd [#allocation14], 4294965248  ;;  %v3138_v0 = vld [vmem:[#allocation7 + $0xac] ss:$12 sps:$4 sm:$0xff]   ;;  %v3142_v2 = vld [vmem:[#allocation7 + $0xa8] ss:$12 sps:$4 sm:$0xff]   ;;  %v335_v41 = vlaneseq }
  0x4d   :  { %v3140_v1 = vld [vmem:[#allocation7 + $0x22c] ss:$12 sps:$4 sm:$0xff]   ;;  %1232 = vmatprep.subr.bf16.mxu0 %v3138_v0  ;;  %v3143_v3 = vld [vmem:[#allocation7 + $0x228] ss:$12 sps:$4 sm:$0xff]   ;;  %v3148_v6 = vld [vmem:[#allocation7 + $0x90] ss:$12 sps:$4 sm:$0xff]  }
  0x4e   :  { %1275 = vmatprep.subr.bf16.mxu1 %v3140_v1  ;;  %v3144_v4 = vld [vmem:[#allocation7 + $0x94] ss:$12 sps:$4 sm:$0xff]   ;;  %1233 = vmatpush1.bf16.msra.mxu0 %v3142_v2  ;;  %v3149_v7 = vld [vmem:[#allocation7 + $0x210] ss:$12 sps:$4 sm:$0xff]   ;;  %v3154_v10 = vld [vmem:[#allocation7 + $0x78] ss:$12 sps:$4 sm:$0xff]  }
  0x4f   :  { %1276 = vmatpush1.bf16.msra.mxu1 %v3143_v3  ;;  %v3146_v5 = vld [vmem:[#allocation7 + $0x214] ss:$12 sps:$4 sm:$0xff]   ;;  %1234 = vmatprep.subr.bf16.mxu0 %v3144_v4  ;;  %v3150_v8 = vld [vmem:[#allocation7 + $0x7c] ss:$12 sps:$4 sm:$0xff]   ;;  %v3155_v11 = vld [vmem:[#allocation7 + $0x1f8] ss:$12 sps:$4 sm:$0xff]  }
  0x50   :  { %1277 = vmatprep.subr.bf16.mxu1 %v3146_v5  ;;  %v3152_v9 = vld [vmem:[#allocation7 + $0x1fc] ss:$12 sps:$4 sm:$0xff]   ;;  %v3156_v12 = vld [vmem:[#allocation7 + $0x64] ss:$12 sps:$4 sm:$0xff]   ;;  %v3160_v14 = vld [vmem:[#allocation7 + $0x60] ss:$12 sps:$4 sm:$0xff]  }
  0x51   :  { %v3158_v13 = vld [vmem:[#allocation7 + $0x1e4] ss:$12 sps:$4 sm:$0xff]   ;;  %v3161_v15 = vld [vmem:[#allocation7 + $0x1e0] ss:$12 sps:$4 sm:$0xff]   ;;  %v3166_v18 = vld [vmem:[#allocation7 + $0x48] ss:$12 sps:$4 sm:$0xff]  }
  0x52   :  { %1235 = vmatpush1.bf16.msra.mxu0 %v3148_v6  ;;  %v3162_v16 = vld [vmem:[#allocation7 + $0x4c] ss:$12 sps:$4 sm:$0xff]   ;;  %v3167_v19 = vld [vmem:[#allocation7 + $0x1c8] ss:$12 sps:$4 sm:$0xff]   ;;  %v3172_v22 = vld [vmem:[#allocation7 + $0x30] ss:$12 sps:$4 sm:$0xff]  }
  0x53   :  { %1278 = vmatpush1.bf16.msra.mxu1 %v3149_v7  ;;  %1236 = vmatprep.subr.bf16.mxu0 %v3150_v8  ;;  %v3164_v17 = vld [vmem:[#allocation7 + $0x1cc] ss:$12 sps:$4 sm:$0xff]   ;;  %v3168_v20 = vld [vmem:[#allocation7 + $0x34] ss:$12 sps:$4 sm:$0xff]   ;;  %v3173_v23 = vld [vmem:[#allocation7 + $0x1b0] ss:$12 sps:$4 sm:$0xff]  }
  0x54   :  { %1279 = vmatprep.subr.bf16.mxu1 %v3152_v9  ;;  %v3170_v21 = vld [vmem:[#allocation7 + $0x1b4] ss:$12 sps:$4 sm:$0xff]   ;;  %v3174_v24 = vld [vmem:[#allocation7 + $0x1c] ss:$12 sps:$4 sm:$0xff]   ;;  %v3178_v26 = vld [vmem:[#allocation7 + $0x18] ss:$12 sps:$4 sm:$0xff]  }
  0x55   :  { %v3176_v25 = vld [vmem:[#allocation7 + $0x19c] ss:$12 sps:$4 sm:$0xff]   ;;  %v3179_v27 = vld [vmem:[#allocation7 + $0x198] ss:$12 sps:$4 sm:$0xff]   ;;  %v3184_v30 = vld [vmem:[#allocation7] ss:$12 sps:$4 sm:$0xff]  }
  0x56   :  { %1237 = vmatpush1.bf16.msra.mxu0 %v3154_v10  ;;  %v3180_v28 = vld [vmem:[#allocation7 + $0x4] ss:$12 sps:$4 sm:$0xff]   ;;  %v3185_v31 = vld [vmem:[#allocation7 + $0x180] ss:$12 sps:$4 sm:$0xff]   ;;  %v3190_v34 = vld [vmem:[#allocation7 + $0x168] ss:$12 sps:$4 sm:$0xff]  }
  0x57   :  { %1280 = vmatpush1.bf16.msra.mxu1 %v3155_v11  ;;  %1238 = vmatprep.subr.bf16.mxu0 %v3156_v12  ;;  %v3182_v29 = vld [vmem:[#allocation7 + $0x184] ss:$12 sps:$4 sm:$0xff]   ;;  %v3186_v32 = vld [vmem:[#allocation7 + $0x16c] ss:$12 sps:$4 sm:$0xff]   ;;  %v3191_v35 = vld [vmem:[#allocation7 + $0x2e8] ss:$12 sps:$4 sm:$0xff]  }
  0x58   :  { %1281 = vmatprep.subr.bf16.mxu1 %v3158_v13  ;;  %v3188_v33 = vld [vmem:[#allocation7 + $0x2ec] ss:$12 sps:$4 sm:$0xff]   ;;  %v3192_v36 = vld [vmem:[#allocation7 + $0x154] ss:$12 sps:$4 sm:$0xff]   ;;  %v3196_v38 = vld [vmem:[#allocation7 + $0x150] ss:$12 sps:$4 sm:$0xff]  }
  0x59   :  { %v3194_v37 = vld [vmem:[#allocation7 + $0x2d4] ss:$12 sps:$4 sm:$0xff]   ;;  %v3672_v39 = vmov 1966171168   ;;  %v3197_v42 = vld [vmem:[#allocation7 + $0x2d0] ss:$12 sps:$4 sm:$0xff]  }
  0x5a   :  { %1239 = vmatpush1.bf16.msra.mxu0 %v3160_v14  ;;  %v333_v40 = vunpack.c.l.s4 %v3672_v39  ;;  %v3198_v43 = vld [vmem:[#allocation7 + $0x13c] ss:$12 sps:$4 sm:$0xff]   ;;  %v3202_v45 = vld [vmem:[#allocation7 + $0x138] ss:$12 sps:$4 sm:$0xff]   ;;  %v3759_v48 = vshrl.u32 %v335_v41, 7  ;;  %vm1496_vm0 = vcmask 1045504  }
  0x5b   :  { %1282 = vmatpush1.bf16.msra.mxu1 %v3161_v15  ;;  %1240 = vmatprep.subr.bf16.mxu0 %v3162_v16  ;;  %v3200_v44 = vld [vmem:[#allocation7 + $0x2bc] ss:$12 sps:$4 sm:$0xff]   ;;  %v3203_v46 = vld [vmem:[#allocation7 + $0x2b8] ss:$12 sps:$4 sm:$0xff]   ;;  %v3208_v51 = vld [vmem:[#allocation7 + $0x120] ss:$12 sps:$4 sm:$0xff]  }
  0x5c   :  { %1283 = vmatprep.subr.bf16.mxu1 %v3164_v17  ;;  %v334_v47 = vunpack.c.0.s8 %v333_v40  ;;  %v3204_v49 = vld [vmem:[#allocation7 + $0x124] ss:$12 sps:$4 sm:$0xff]   ;;  %v3209_v52 = vld [vmem:[#allocation7 + $0x2a0] ss:$12 sps:$4 sm:$0xff]   ;;  %v3214_v58 = vld [vmem:[#allocation7 + $0x108] ss:$12 sps:$4 sm:$0xff]  }
  0x5d   :  { %v3206_v50 = vld [vmem:[#allocation7 + $0x2a4] ss:$12 sps:$4 sm:$0xff]   ;;  %v3210_v53 = vld [vmem:[#allocation7 + $0x10c] ss:$12 sps:$4 sm:$0xff]   ;;  %v3215_v59 = vld [vmem:[#allocation7 + $0x288] ss:$12 sps:$4 sm:$0xff]  }
  0x5e   :  { %1241 = vmatpush1.bf16.msra.mxu0 %v3166_v18  ;;  %v3212_v54 = vld [vmem:[#allocation7 + $0x28c] ss:$12 sps:$4 sm:$0xff]   ;;  %v3762_v55 = vsub.s32 %v334_v47, %v3759_v48  ;;  %v3237_v57 = vld [vmem:[#allocation4 + $0xc] ss:$6 sps:$4 sm:$0xff]   ;;  %vm1765_vm1 = vcmask 523264   ;;  %vm3677_vm2 = vmmov 0  }
  0x5f   :  { %1284 = vmatpush1.bf16.msra.mxu1 %v3167_v19  ;;  %1242 = vmatprep.subr.bf16.mxu0 %v3168_v20  ;;  %v3234_v56 = vld [vmem:[#allocation4] ss:$6 sps:$4 sm:$0xff]   ;;  %v3236_v62 = vld [vmem:[#allocation4 + $0x4] ss:$6 sps:$4 sm:$0x33]   ;;  %s3678_s23 = smov [#allocation15]  }
  0x60   :  { %1285 = vmatprep.subr.bf16.mxu1 %v3170_v21  ;;  %v3216_v60 = vld [vmem:[#allocation7 + $0xf4] ss:$12 sps:$4 sm:$0xff]   ;;  %v3240_v63 = vld [vmem:[#allocation4 + $0x18] ss:$6 sps:$4 sm:$0xff]   ;;  %v338_v0 = vrot.slane %v3234_v56, %v3762_v55  ;;  %v352_v1 = vrot.slane %v3237_v57, %v3762_v55  ;;  %v3770_v15 = vrot.slane %v3236_v62, %v3762_v55  ;;  %v3226_v16 = vld [vmem:[#allocation7 + $0xd8] ss:$12 sps:$4 sm:$0xff]  }
  0x61   :  { %v3218_v61 = vld [vmem:[#allocation7 + $0x274] ss:$12 sps:$4 sm:$0xff]   ;;  %v3242_v3 = vld [vmem:[#allocation4 + $0x1c] ss:$6 sps:$4 sm:$0x33]   ;;  %v366_v6 = vrot.slane %v3240_v63, %v3762_v55  ;;  %s2775_s24 = sshll.u32 %s3678_s23, 4  ;;  %s2776_s24 = int_to_ptr.vmem [resolvable:$true] %s2775_s24 }
  0x62   :  { %1243 = vmatpush1.bf16.msra.mxu0 %v3172_v22  ;;  %v3239_v2 = vld [vmem:[#allocation4 + $0x10] ss:$6 sps:$4 sm:$0x33]   ;;  %v3243_v4 = vld [vmem:[#allocation4 + $0x24] ss:$6 sps:$4 sm:$0xff]   ;;  %v389_v7 = vcombine.high %v338_v0, %v352_v1  ;;  %v3777_v19 = vrot.slane %v3242_v3, %v3762_v55  ;;  %v388_v22 = vcombine.low %v338_v0, %v352_v1  ;;  %s3630_s1 = scalar_lea.vmem %s2776_s24, 32  ;;  %p3635_p3 = scmp.lt.s32.totalorder %s2776_s24, %s2776_s24 }
  0x63   :  { %1286 = vmatpush1.bf16.msra.mxu1 %v3173_v23  ;;  %1244 = vmatprep.subr.bf16.mxu0 %v3174_v24  ;;  %v3245_v5 = vld [vmem:[#allocation4 + $0x28] ss:$6 sps:$4 sm:$0x33]   ;;  %v380_v8 = vrot.slane %v3243_v4, %v3762_v55  ;;  %v3774_v18 = vrot.slane %v3239_v2, %v3762_v55  ;;  %v3228_v24 = vld [vmem:[#allocation7 + $0xc4] ss:$12 sps:$4 sm:$0xff]   ;;  %p3631_p2 = scmp.ne.s32.totalorder %s2776_s24, %s3630_s1  ;;  %p3636_p4 = scmp.lt.s32.totalorder %s3630_s1, %s3630_s1 }
  0x64   :  { %1287 = vmatprep.subr.bf16.mxu1 %v3176_v25  ;;  %v3220_v9 = vld [vmem:[#allocation7 + $0xf0] ss:$12 sps:$4 sm:$0xff]   ;;  %v416_v13 = vrot.slane %v389_v7, %v3762_v55  ;;  %v3780_v20 = vrot.slane %v3245_v5, %v3762_v55  ;;  %v3227_v21 = vld [vmem:[#allocation7 + $0x258] ss:$12 sps:$4 sm:$0xff]   ;;  %v3265_v56 = vld [vmem:[#allocation7 + $0x68] ss:$12 sps:$4 sm:$0xff]  }
  0x65   :  { %v3221_v10 = vld [vmem:[#allocation7 + $0x270] ss:$12 sps:$4 sm:$0xff]   ;;  %v393_v12 = vcombine.high %v366_v6, %v380_v8  ;;  %v392_v23 = vcombine.low %v366_v6, %v380_v8  ;;  %v3268_v57 = vld [vmem:[#allocation7 + $0x34c] ss:$12 sps:$4 sm:$0xff]   ;;  %v3284_v6 = vld [vmem:[#allocation7 + $0xc8] ss:$12 sps:$4 sm:$0xff]   ;;  %p3637_p5 = por %p3636_p4, %p3635_p3 }
  0x66   :  { %1245 = vmatpush1.bf16.msra.mxu0 %v3178_v26  ;;  %v3222_v11 = vld [vmem:[#allocation7 + $0xdc] ss:$12 sps:$4 sm:$0xff]   ;;  %v3274_v62 = vld [vmem:[#allocation7 + $0xf8] ss:$12 sps:$4 sm:$0xff]   ;;  %v3279_v2 = vld [vmem:[#allocation7 + $0xe0] ss:$12 sps:$4 sm:$0xff]  }
  0x67   :  { %1288 = vmatpush1.bf16.msra.mxu1 %v3179_v27  ;;  %1246 = vmatprep.subr.bf16.mxu0 %v3180_v28  ;;  %v3224_v14 = vld [vmem:[#allocation7 + $0x25c] ss:$12 sps:$4 sm:$0xff]   ;;  %v444_v17 = vrot.slane %v393_v12, %v3762_v55  ;;  %v3230_v27 = vld [vmem:[#allocation7 + $0x244] ss:$12 sps:$4 sm:$0xff]   ;;  %v391_v28 = vcombine.high %v3770_v15, %v3774_v18  ;;  %v3280_v4 = vld [vmem:[#allocation7 + $0x20] ss:$12 sps:$4 sm:$0xff]   ;;  %p3638_p6 = pnand %p3637_p5, %p3631_p2 }
  0x68   :  { %1289 = vmatprep.subr.bf16.mxu1 %v3182_v29  ;;  %v395_v29 = vcombine.high %v3777_v19, %v3780_v20  ;;  %v3250_v41 = vld [vmem:[#allocation7 + $0xb0] ss:$12 sps:$4 sm:$0xff]   ;;  %v3275_v0 = vld [vmem:[#allocation7 + $0x38] ss:$12 sps:$4 sm:$0xff]   ;;  %v3281_v7 = vld [vmem:[#allocation7 + $0x300] ss:$12 sps:$4 sm:$0xff]  }
  0x69   :  { %v455_v25 = vcombine.low %v416_v13, %v444_v17  ;;  %v3782_v26 = vcombine.high %v416_v13, %v444_v17  ;;  %v3258_v47 = vld [vmem:[#allocation7 + $0x37c] ss:$12 sps:$4 sm:$0xff]   ;;  %v3276_v3 = vld [vmem:[#allocation7 + $0x318] ss:$12 sps:$4 sm:$0xff]   ;;  %v3293_v13 = vld [vmem:[#allocation7 + $0x454] ss:$12 sps:$4 sm:$0xff]  }
  0x6a   :  { %1247 = vmatpush1.bf16.msra.mxu0 %v3184_v30  ;;  %v3232_v30 = vld [vmem:[#allocation7 + $0xc0] ss:$12 sps:$4 sm:$0xff]   ;;  %v3271_v63 = vld [vmem:[#allocation7 + $0x330] ss:$12 sps:$4 sm:$0xff]   ;;  %v3285_v8 = vld [vmem:[#allocation7 + $0x8] ss:$12 sps:$4 sm:$0xff]  }
  0x6b   :  { %1290 = vmatpush1.bf16.msra.mxu1 %v3185_v31  ;;  %1248 = vmatprep.subr.bf16.mxu0 %v3186_v32  ;;  %v3233_v31 = vld [vmem:[#allocation7 + $0x240] ss:$12 sps:$4 sm:$0xff]   ;;  %v402_v32 = vrot.slane %v388_v22, %v3762_v55  ;;  %v3278_v1 = vld [vmem:[#allocation7 + $0x31c] ss:$12 sps:$4 sm:$0xff]   ;;  %v3283_v5 = vld [vmem:[#allocation7 + $0x304] ss:$12 sps:$4 sm:$0xff]  }
  0x6c   :  { %1291 = vmatprep.subr.bf16.mxu1 %v3188_v33  ;;  %1264 = vmatprep.mubr.bf16.mxu0 %v455_v25  ;;  %v430_v33 = vrot.slane %v392_v23, %v3762_v55  ;;  %v3290_v12 = vld [vmem:[#allocation7 + $0x230] ss:$12 sps:$4 sm:$0xff]   ;;  %v3295_v17 = vld [vmem:[#allocation7 + $0x218] ss:$12 sps:$4 sm:$0xff]   ;;  %v3299_v22 = vld [vmem:[#allocation7 + $0x2c0] ss:$12 sps:$4 sm:$0xff]  }
  0x6d   :  { %1307 = vmatprep.mubr.bf16.mxu1 %v3782_v26  ;;  %v3296_v23 = vld [vmem:[#allocation7 + $0x438] ss:$12 sps:$4 sm:$0xff]  }
  0x6e   :  { %1249 = vmatpush2.bf16.msra.mxu0 %v3190_v34  ;;  %v3248_v34 = vld [vmem:[#allocation7 + $0x3ac] ss:$12 sps:$4 sm:$0xff]   ;;  %v3793_v39 = vcombine.low %v402_v32, %v430_v33  ;;  %v3795_v40 = vcombine.high %v402_v32, %v430_v33  ;;  %v3306_v32 = vld [vmem:[#allocation7 + $0x408] ss:$12 sps:$4 sm:$0xff]   ;;  %v3310_v33 = vld [vmem:[#allocation7 + $0x1d0] ss:$12 sps:$4 sm:$0xff]  }
  0x6f   :  { %1292 = vmatpush2.bf16.msra.mxu1 %v3191_v35  ;;  %1250 = vmatprep.subr.bf16.mxu0 %v3192_v36  ;;  %v3249_v35 = vld [vmem:[#allocation7 + $0x170] ss:$12 sps:$4 sm:$0xff]   ;;  %v3246_v36 = vld [vmem:[#allocation7 + $0x3a8] ss:$12 sps:$4 sm:$0xff]  }
  0x70   :  { %1293 = vmatprep.subr.bf16.mxu1 %v3194_v37  ;;  %v423_v37 = vrot.slane %v391_v28, %v3762_v55  ;;  %v3301_v28 = vld [vmem:[#allocation7 + $0x420] ss:$12 sps:$4 sm:$0xff]  }
  0x72   :  { %1251 = vmatpush2.bf16.msra.mxu0 %v3196_v38  ;;  %v451_v38 = vrot.slane %v395_v29, %v3762_v55  ;;  %v3305_v29 = vld [vmem:[#allocation7 + $0x1e8] ss:$12 sps:$4 sm:$0xff]  }
  0x73   :  { %1294 = vmatpush2.bf16.msra.mxu1 %v3197_v42  ;;  %1252 = vmatprep.subr.bf16.mxu0 %v3198_v43  ;;  %v3253_v42 = vld [vmem:[#allocation7 + $0x394] ss:$12 sps:$4 sm:$0xff]   ;;  %v3254_v43 = vld [vmem:[#allocation7 + $0x158] ss:$12 sps:$4 sm:$0xff]  }
  0x74   :  { %1295 = vmatprep.subr.bf16.mxu1 %v3200_v44  ;;  %v3797_v44 = vcombine.low %v423_v37, %v451_v38  ;;  %v3318_v37 = vld [vmem:[#allocation7 + $0x3dc] ss:$12 sps:$4 sm:$0xff]   ;;  %v3319_v38 = vld [vmem:[#allocation7 + $0x260] ss:$12 sps:$4 sm:$0xff]  }
  0x76   :  { %1253 = vmatpush2.bf16.msra.mxu0 %v3202_v45  ;;  %v3251_v45 = vld [vmem:[#allocation7 + $0x390] ss:$12 sps:$4 sm:$0xff]  }
  0x77   :  { %1296 = vmatpush2.bf16.msra.mxu1 %v3203_v46  ;;  %1254 = vmatprep.subr.bf16.mxu0 %v3204_v49  ;;  %v3255_v46 = vld [vmem:[#allocation7 + $0x98] ss:$12 sps:$4 sm:$0xff]   ;;  %v3259_v49 = vld [vmem:[#allocation7 + $0x140] ss:$12 sps:$4 sm:$0xff]  }
  0x78   :  { %1297 = vmatprep.subr.bf16.mxu1 %v3206_v50  ;;  %v3256_v50 = vld [vmem:[#allocation7 + $0x378] ss:$12 sps:$4 sm:$0xff]  }
  0x7a   :  { %1255 = vmatpush2.bf16.msra.mxu0 %v3208_v51  ;;  %v3260_v51 = vld [vmem:[#allocation7 + $0x80] ss:$12 sps:$4 sm:$0xff]  }
  0x7b   :  { %1298 = vmatpush2.bf16.msra.mxu1 %v3209_v52  ;;  %1256 = vmatprep.subr.bf16.mxu0 %v3210_v53  ;;  %v3263_v52 = vld [vmem:[#allocation7 + $0x364] ss:$12 sps:$4 sm:$0xff]   ;;  %v3264_v53 = vld [vmem:[#allocation7 + $0x128] ss:$12 sps:$4 sm:$0xff]  }
  0x7c   :  { %1299 = vmatprep.subr.bf16.mxu1 %v3212_v54  ;;  %v3261_v54 = vld [vmem:[#allocation7 + $0x360] ss:$12 sps:$4 sm:$0xff]  }
  0x7e   :  { %1257 = vmatpush2.bf16.msra.mxu0 %v3214_v58  ;;  %v3269_v58 = vld [vmem:[#allocation7 + $0x110] ss:$12 sps:$4 sm:$0xff]  }
  0x7f   :  { %1300 = vmatpush2.bf16.msra.mxu1 %v3215_v59  ;;  %1258 = vmatprep.subr.bf16.mxu0 %v3216_v60  ;;  %v3266_v59 = vld [vmem:[#allocation7 + $0x348] ss:$12 sps:$4 sm:$0xff]   ;;  %v3270_v60 = vld [vmem:[#allocation7 + $0x50] ss:$12 sps:$4 sm:$0xff]  }
  0x80   :  { %1301 = vmatprep.subr.bf16.mxu1 %v3218_v61  ;;  %v3273_v61 = vld [vmem:[#allocation7 + $0x334] ss:$12 sps:$4 sm:$0xff]  }
  0x82   :  { %1259 = vmatpush2.bf16.msra.mxu0 %v3220_v9  ;;  %v3288_v9 = vld [vmem:[#allocation7 + $0x46c] ss:$12 sps:$4 sm:$0xff]  }
  0x83   :  { %1302 = vmatpush2.bf16.msra.mxu1 %v3221_v10  ;;  %1260 = vmatprep.subr.bf16.mxu0 %v3222_v11  ;;  %v3289_v10 = vld [vmem:[#allocation7 + $0x2f0] ss:$12 sps:$4 sm:$0xff]   ;;  %v3286_v11 = vld [vmem:[#allocation7 + $0x468] ss:$12 sps:$4 sm:$0xff]  }
  0x84   :  { %1303 = vmatprep.subr.bf16.mxu1 %v3224_v14  ;;  %v3294_v14 = vld [vmem:[#allocation7 + $0x2d8] ss:$12 sps:$4 sm:$0xff]  }
  0x86   :  { %1261 = vmatpush2.bf16.msra.mxu0 %v3226_v16  ;;  %v3291_v16 = vld [vmem:[#allocation7 + $0x450] ss:$12 sps:$4 sm:$0xff]  }
  0x87   :  { %1304 = vmatpush2.bf16.msra.mxu1 %v3227_v21  ;;  %1262 = vmatprep.subr.bf16.mxu0 %v3228_v24  ;;  %v3298_v21 = vld [vmem:[#allocation7 + $0x43c] ss:$12 sps:$4 sm:$0xff]   ;;  %v3300_v24 = vld [vmem:[#allocation7 + $0x200] ss:$12 sps:$4 sm:$0xff]  }
  0x88   :  { %1305 = vmatprep.subr.bf16.mxu1 %v3230_v27  ;;  %v3304_v27 = vld [vmem:[#allocation7 + $0x2a8] ss:$12 sps:$4 sm:$0xff]  }
  0x8a   :  { %1263 = vmatpush2.bf16.msra.mxu0 %v3232_v30  ;;  %v3308_v30 = vld [vmem:[#allocation7 + $0x40c] ss:$12 sps:$4 sm:$0xff]  }
  0x8b   :  { %1306 = vmatpush2.bf16.msra.mxu1 %v3233_v31  ;;  %1318 = vmatprep.subr.bf16.mxu0 %v3248_v34  ;;  %v3309_v31 = vld [vmem:[#allocation7 + $0x290] ss:$12 sps:$4 sm:$0xff]   ;;  %v3314_v34 = vld [vmem:[#allocation7 + $0x278] ss:$12 sps:$4 sm:$0xff]  }
  0x8c   :  { %3001 = vmatprep.subr.bf16.mxu1 %v3249_v35  ;;  %v3311_v35 = vld [vmem:[#allocation7 + $0x3f0] ss:$12 sps:$4 sm:$0xff]  }
  0x8d   :  { %1265 = vmatmul.mubr.bf16.vlgmr.msra.gmra.mxu0 %v3793_v39 }
  0x8e   :  { %1308 = vmatmul.mubr.bf16.vlgmr.msra.gmra.mxu1 %v3795_v40  ;;  %1319 = vmatpush1.bf16.msra.mxu0 %v3246_v36  ;;  %v3315_v36 = vld [vmem:[#allocation7 + $0x1b8] ss:$12 sps:$4 sm:$0xff]  }
  0x8f   :  { %3002 = vmatpush3.bf16.msra.mxu1 %v3250_v41  ;;  %1320 = vmatprep.subr.bf16.mxu0 %v3253_v42  ;;  %v3320_v41 = vld [vmem:[#allocation7 + $0x1a0] ss:$12 sps:$4 sm:$0xff]   ;;  %v3323_v42 = vld [vmem:[#allocation7 + $0x3c4] ss:$12 sps:$4 sm:$0xff]  }
  0x90   :  { %3003 = vmatprep.subr.bf16.mxu1 %v3254_v43  ;;  %1393 = vmatprep.mubr.bf16.mxu1 %v455_v25  ;;  %v3303_v25 = vld [vmem:[#allocation7 + $0x424] ss:$12 sps:$4 sm:$0xff]   ;;  %v3324_v43 = vld [vmem:[#allocation7 + $0x248] ss:$12 sps:$4 sm:$0xff]  }
  0x91   :  { %1350 = vmatprep.mubr.bf16.mxu0 %v3797_v44 }
  0x92   :  { %1321 = vmatpush1.bf16.msra.mxu0 %v3251_v45  ;;  %v390_v45 = vcombine.low %v3770_v15, %v3774_v18  ;;  %v3328_v18 = vld [vmem:[#allocation7 + $0x458] ss:$12 sps:$4 sm:$0xff]  }
  0x93   :  { %3004 = vmatpush3.bf16.msra.mxu1 %v3255_v46  ;;  %1322 = vmatprep.subr.bf16.mxu0 %v3258_v47  ;;  %v394_v46 = vcombine.low %v3777_v19, %v3780_v20  ;;  %v3321_v47 = vld [vmem:[#allocation7 + $0x3c0] ss:$12 sps:$4 sm:$0xff]   ;;  %v3329_v19 = vld [vmem:[#allocation7 + $0x398] ss:$12 sps:$4 sm:$0xff]  }
  0x94   :  { %3005 = vmatprep.subr.bf16.mxu1 %v3259_v49  ;;  %v3325_v49 = vld [vmem:[#allocation7 + $0x188] ss:$12 sps:$4 sm:$0xff]   ;;  %v3331_v20 = vld [vmem:[#allocation7 + $0x380] ss:$12 sps:$4 sm:$0xff]  }
  0x96   :  { %1323 = vmatpush1.bf16.msra.mxu0 %v3256_v50  ;;  %v409_v50 = vrot.slane %v390_v45, %v3762_v55 }
  0x97   :  { %3006 = vmatpush3.bf16.msra.mxu1 %v3260_v51  ;;  %1324 = vmatprep.subr.bf16.mxu0 %v3263_v52  ;;  %v437_v51 = vrot.slane %v394_v46, %v3762_v55  ;;  %v3326_v52 = vld [vmem:[#allocation7 + $0x470] ss:$12 sps:$4 sm:$0xff]   ;;  %v3330_v55 = vld [vmem:[#allocation7 + $0x440] ss:$12 sps:$4 sm:$0xff]  }
  0x98   :  { %3007 = vmatprep.subr.bf16.mxu1 %v3264_v53  ;;  %v3327_v53 = vld [vmem:[#allocation7 + $0x3b0] ss:$12 sps:$4 sm:$0xff]  }
  0x99   :  { %v454_v15 = vcombine.low %v409_v50, %v437_v51 }
  0x9a   :  { %1325 = vmatpush1.bf16.msra.mxu0 %v3261_v54  ;;  %v3332_v54 = vld [vmem:[#allocation7 + $0x428] ss:$12 sps:$4 sm:$0xff]  }
  0x9b   :  { %3008 = vmatpush3.bf16.msra.mxu1 %v3265_v56  ;;  %1326 = vmatprep.subr.bf16.mxu0 %v3268_v57  ;;  %v3333_v56 = vld [vmem:[#allocation7 + $0x368] ss:$12 sps:$4 sm:$0xff]   ;;  %v3334_v57 = vld [vmem:[#allocation7 + $0x410] ss:$12 sps:$4 sm:$0xff]  }
  0x9c   :  { %3009 = vmatprep.subr.bf16.mxu1 %v3269_v58  ;;  %v3335_v58 = vld [vmem:[#allocation7 + $0x350] ss:$12 sps:$4 sm:$0xff]  }
  0x9e   :  { %1327 = vmatpush1.bf16.msra.mxu0 %v3266_v59  ;;  %v3336_v59 = vld [vmem:[#allocation7 + $0x3f8] ss:$12 sps:$4 sm:$0xff]  }
  0x9f   :  { %3010 = vmatpush3.bf16.msra.mxu1 %v3270_v60  ;;  %1328 = vmatprep.subr.bf16.mxu0 %v3273_v61  ;;  %v3338_v60 = vld [vmem:[#allocation7 + $0x3e0] ss:$12 sps:$4 sm:$0xff]   ;;  %v3340_v61 = vld [vmem:[#allocation7 + $0x3c8] ss:$12 sps:$4 sm:$0xff]  }
  0xa0   :  { %3011 = vmatprep.subr.bf16.mxu1 %v3274_v62  ;;  %v3341_v62 = vld [vmem:[#allocation7 + $0x308] ss:$12 sps:$4 sm:$0xff]  }
  0xa2   :  { %1329 = vmatpush1.bf16.msra.mxu0 %v3271_v63  ;;  %v3342_v63 = vld [vmem:[#allocation9 + $0x70] ss:$8 sps:$4 sm:$0xff]  }
  0xa3   :  { %3012 = vmatpush3.bf16.msra.mxu1 %v3275_v0  ;;  %1330 = vmatprep.subr.bf16.mxu0 %v3278_v1  ;;  %v3344_v0 = vld [vmem:[#allocation9 + $0x74] ss:$8 sps:$4 sm:$0xff]   ;;  %v3347_v1 = vld [vmem:[#allocation9 + $0x64] ss:$8 sps:$4 sm:$0xff]  }
  0xa4   :  { %3013 = vmatprep.subr.bf16.mxu1 %v3279_v2  ;;  %v3345_v2 = vld [vmem:[#allocation9 + $0x60] ss:$8 sps:$4 sm:$0xff]  }
  0xa6   :  { %1331 = vmatpush1.bf16.msra.mxu0 %v3276_v3  ;;  %v3350_v3 = vld [vmem:[#allocation9 + $0x54] ss:$8 sps:$4 sm:$0xff]  }
  0xa7   :  { %3014 = vmatpush3.bf16.msra.mxu1 %v3280_v4  ;;  %1332 = vmatprep.subr.bf16.mxu0 %v3283_v5  ;;  %v3348_v4 = vld [vmem:[#allocation9 + $0x50] ss:$8 sps:$4 sm:$0xff]   ;;  %v3353_v5 = vld [vmem:[#allocation9 + $0x44] ss:$8 sps:$4 sm:$0xff]  }
  0xa8   :  { %3015 = vmatprep.subr.bf16.mxu1 %v3284_v6  ;;  %v3351_v6 = vld [vmem:[#allocation9 + $0x40] ss:$8 sps:$4 sm:$0xff]  }
  0xaa   :  { %1333 = vmatpush1.bf16.msra.mxu0 %v3281_v7  ;;  %v3356_v7 = vld [vmem:[#allocation9 + $0x34] ss:$8 sps:$4 sm:$0xff]  }
  0xab   :  { %3016 = vmatpush3.bf16.msra.mxu1 %v3285_v8  ;;  %1334 = vmatprep.subr.bf16.mxu0 %v3288_v9  ;;  %v3354_v8 = vld [vmem:[#allocation9 + $0x30] ss:$8 sps:$4 sm:$0xff]   ;;  %v3812_v9 = vld [vmem:[#allocation10 + $0x34] ss:$8 sps:$4 sm:$0xff]  }
  0xac   :  { %3023 = vmatprep.subr.bf16.mxu1 %v3289_v10  ;;  %v3814_v10 = vld [vmem:[#allocation10 + $0x30] ss:$8 sps:$4 sm:$0xff]  }
  0xae   :  { %1394 = vmatmul.mubr.bf16.vlgmr.msra.gmra.mxu1 %v3793_v39  ;;  %1335 = vmatpush2.bf16.msra.mxu0 %v3286_v11  ;;  %v3316_v39 = vld [vmem:[#allocation7 + $0x3d8] ss:$12 sps:$4 sm:$0xff]  }
  0xaf   :  { %3024 = vmatpush3.bf16.msra.mxu1 %v3290_v12  ;;  %1336 = vmatprep.subr.bf16.mxu0 %v3293_v13  ;;  %v3362_v11 = vld [vmem:[#allocation9 + $0x24] ss:$8 sps:$4 sm:$0xff]   ;;  %v3360_v12 = vld [vmem:[#allocation9 + $0x20] ss:$8 sps:$4 sm:$0xff]  }
  0xb0   :  { %3025 = vmatprep.subr.bf16.mxu1 %v3294_v14  ;;  %1434 = vmatprep.mubr.bf16.mxu1 %v3782_v26  ;;  %v3313_v26 = vld [vmem:[#allocation7 + $0x3f4] ss:$12 sps:$4 sm:$0xff]   ;;  %v3818_v13 = vld [vmem:[#allocation10 + $0x24] ss:$8 sps:$4 sm:$0xff]  }
  0xb1   :  { %v3820_v14 = vld [vmem:[#allocation10 + $0x20] ss:$8 sps:$4 sm:$0xff]  }
  0xb2   :  { %1337 = vmatpush2.bf16.msra.mxu0 %v3291_v16  ;;  %v3368_v16 = vld [vmem:[#allocation9 + $0x14] ss:$8 sps:$4 sm:$0xff]  }
  0xb3   :  { %3026 = vmatpush3.bf16.msra.mxu1 %v3295_v17  ;;  %1338 = vmatprep.subr.bf16.mxu0 %v3298_v21  ;;  %v3366_v17 = vld [vmem:[#allocation9 + $0x10] ss:$8 sps:$4 sm:$0xff]   ;;  %v3824_v21 = vld [vmem:[#allocation10 + $0x14] ss:$8 sps:$4 sm:$0xff]  }
  0xb4   :  { %3027 = vmatprep.subr.bf16.mxu1 %v3299_v22  ;;  %v3826_v22 = vld [vmem:[#allocation10 + $0x10] ss:$8 sps:$4 sm:$0xff]  }
  0xb6   :  { %1339 = vmatpush2.bf16.msra.mxu0 %v3296_v23  ;;  %v3374_v23 = vld [vmem:[#allocation9 + $0x4] ss:$8 sps:$4 sm:$0xff]  }
  0xb7   :  { %3028 = vmatpush3.bf16.msra.mxu1 %v3300_v24  ;;  %1340 = vmatprep.subr.bf16.mxu0 %v3303_v25  ;;  %v3828_v24 = vld [vmem:[#allocation10 + $0x4] ss:$8 sps:$4 sm:$0xff]   ;;  %v3372_v25 = vld [vmem:[#allocation9] ss:$8 sps:$4 sm:$0xff]  }
  0xb8   :  { %3029 = vmatprep.subr.bf16.mxu1 %v3304_v27  ;;  %v3673_v27 = vmov 0  }
  0xba   :  { %1341 = vmatpush2.bf16.msra.mxu0 %v3301_v28  ;;  %v3833_v28 = vld [vmem:[#allocation10] ss:$8 sps:$4 sm:$0xff]  }
  0xbb   :  { %3030 = vmatpush3.bf16.msra.mxu1 %v3305_v29  ;;  %1342 = vmatprep.subr.bf16.mxu0 %v3308_v30 }
  0xbc   :  { %3031 = vmatprep.subr.bf16.mxu1 %v3309_v31 }
  0xbe   :  { %1343 = vmatpush2.bf16.msra.mxu0 %v3306_v32 }
  0xbf   :  { %3032 = vmatpush3.bf16.msra.mxu1 %v3310_v33  ;;  %1344 = vmatprep.subr.bf16.mxu0 %v3313_v26 }
  0xc0   :  { %3033 = vmatprep.subr.bf16.mxu1 %v3314_v34 }
  0xc2   :  { %1345 = vmatpush2.bf16.msra.mxu0 %v3311_v35 }
  0xc3   :  { %3034 = vmatpush3.bf16.msra.mxu1 %v3315_v36  ;;  %1346 = vmatprep.subr.bf16.mxu0 %v3318_v37 }
  0xc4   :  { %3035 = vmatprep.subr.bf16.mxu1 %v3319_v38 }
  0xc6   :  { %1347 = vmatpush2.bf16.msra.mxu0 %v3316_v39 }
  0xc7   :  { %3036 = vmatpush3.bf16.msra.mxu1 %v3320_v41  ;;  %1348 = vmatprep.subr.bf16.mxu0 %v3323_v42 }
  0xc8   :  { %3037 = vmatprep.subr.bf16.mxu1 %v3324_v43 }
  0xca   :  { %1349 = vmatpush2.bf16.msra.mxu0 %v3321_v47 }
  0xcb   :  { %3038 = vmatpush3.bf16.msra.mxu1 %v3325_v49  ;;  %3045 = vmatprep.subr.bf16.mxu0 %v3326_v52 }
  0xcc   :  { %1617 = vmatprep.subr.bf16.mxu1 %v3344_v0 }
  0xcd   :  { %1351 = vmatmul.mubr.bf16.vlgmr.msra.gmra.mxu0 %v454_v15 }
  0xce   :  { %1435 = vmatmul.mubr.bf16.vlgmr.msra.gmra.mxu1 %v3795_v40  ;;  %3046 = vmatpush3.bf16.msra.mxu0 %v3327_v53  ;;  %v3337_v40 = vld [vmem:[#allocation7 + $0x338] ss:$12 sps:$4 sm:$0xff]  }
  0xcf   :  { %1475 = vmatprep.mubr.bf16.mxu0 %v3797_v44  ;;  %3047 = vmatprep.subr.bf16.mxu0 %v3328_v18  ;;  %v3339_v44 = vld [vmem:[#allocation7 + $0x320] ss:$12 sps:$4 sm:$0xff]  }
  0xd0   :  { %1618 = vmatpush1.bf16.msra.mxu1 %v3342_v63  ;;  %1649 = vmatprep.mubr.bf16.mxu1 %v3673_v27 }
  0xd1   :  { %1619 = vmatprep.subr.bf16.mxu1 %v3347_v1 }
  0xd2   :  { %3048 = vmatpush3.bf16.msra.mxu0 %v3329_v19 }
  0xd3   :  { %3049 = vmatprep.subr.bf16.mxu0 %v3330_v55 }
  0xd4   :  { %1620 = vmatpush1.bf16.msra.mxu1 %v3345_v2 }
  0xd5   :  { %1621 = vmatprep.subr.bf16.mxu1 %v3350_v3 }
  0xd6   :  { %3050 = vmatpush3.bf16.msra.mxu0 %v3331_v20 }
  0xd7   :  { %3051 = vmatprep.subr.bf16.mxu0 %v3332_v54 }
  0xd8   :  { %1622 = vmatpush1.bf16.msra.mxu1 %v3348_v4 }
  0xd9   :  { %1623 = vmatprep.subr.bf16.mxu1 %v3353_v5 }
  0xda   :  { %3052 = vmatpush3.bf16.msra.mxu0 %v3333_v56 }
  0xdb   :  { %3053 = vmatprep.subr.bf16.mxu0 %v3334_v57 }
  0xdc   :  { %1624 = vmatpush1.bf16.msra.mxu1 %v3351_v6 }
  0xdd   :  { %1625 = vmatprep.subr.bf16.mxu1 %v3356_v7 }
  0xde   :  { %3054 = vmatpush3.bf16.msra.mxu0 %v3335_v58 }
  0xdf   :  { %3055 = vmatprep.subr.bf16.mxu0 %v3336_v59 }
  0xe0   :  { %1626 = vmatpush1.bf16.msra.mxu1 %v3354_v8 }
  0xe1   :  { %1627 = vmatprep.subr.bf16.mxu1 %v3362_v11 }
  0xe2   :  { %3056 = vmatpush3.bf16.msra.mxu0 %v3337_v40 }
  0xe3   :  { %3057 = vmatprep.subr.bf16.mxu0 %v3338_v60 }
  0xe4   :  { %1628 = vmatpush1.bf16.msra.mxu1 %v3360_v12 }
  0xe5   :  { %1629 = vmatprep.subr.bf16.mxu1 %v3368_v16 }
  0xe6   :  { %3058 = vmatpush3.bf16.msra.mxu0 %v3339_v44 }
  0xe7   :  { %3059 = vmatprep.subr.bf16.mxu0 %v3340_v61 }
  0xe8   :  { %1630 = vmatpush1.bf16.msra.mxu1 %v3366_v17 }
  0xe9   :  { %1631 = vmatprep.subr.bf16.mxu1 %v3374_v23 }
  0xea   :  { %3060 = vmatpush3.bf16.msra.mxu0 %v3341_v62 }
  0xeb   :  { %1777 = vmatprep.subr.bf16.mxu0 %v3812_v9 }
  0xec   :  { %1632 = vmatpush1.bf16.msra.mxu1 %v3372_v25 }
  0xed   :  { %1476 = vmatmul.mubr.bf16.vlgmr.msra.gmra.mxu0 %v454_v15  ;;  %1869 = vmatprep.subr.bf16.mxu1 %v3812_v9 }
  0xee   :  { %1778 = vmatpush1.bf16.msra.mxu0 %v3814_v10  ;;  %1801 = vmatprep.mubr.bf16.mxu0 %v3673_v27 }
  0xef   :  { %1779 = vmatprep.subr.bf16.mxu0 %v3818_v13 }
  0xf2   :  { %1780 = vmatpush1.bf16.msra.mxu0 %v3820_v14 }
  0xf3   :  { %1781 = vmatprep.subr.bf16.mxu0 %v3824_v21 }
  0xf6   :  { %1782 = vmatpush1.bf16.msra.mxu0 %v3826_v22 }
  0xf7   :  { %1783 = vmatprep.subr.bf16.mxu0 %v3828_v24 }
  0xfa   :  { %1784 = vmatpush1.bf16.msra.mxu0 %v3833_v28 }
  0xfb   :  { %1961 = vmatprep.subr.bf16.mxu0 %v3812_v9 }
  0xfd   :  { %1802 = vmatmul.mubr.bf16.vlgmr.msra.gmra.mxu0 %v3673_v27 }
  0xfe   :  { %1962 = vmatpush1.bf16.msra.mxu0 %v3814_v10  ;;  %1985 = vmatprep.mubr.bf16.mxu0 %v3673_v27 }
  0xff   :  { %1963 = vmatprep.subr.bf16.mxu0 %v3818_v13 }
 0x102   :  { %1964 = vmatpush1.bf16.msra.mxu0 %v3820_v14 }
 0x103   :  { %1965 = vmatprep.subr.bf16.mxu0 %v3824_v21 }
 0x106   :  { %1966 = vmatpush1.bf16.msra.mxu0 %v3826_v22 }
 0x107   :  { %1967 = vmatprep.subr.bf16.mxu0 %v3828_v24 }
 0x10a   :  { %1968 = vmatpush1.bf16.msra.mxu0 %v3833_v28 }
 0x10b   :  { %2145 = vmatprep.subr.bf16.mxu0 %v3812_v9 }
 0x14d   :  { %v1266_v29 = vpop.f32.mrf.mxu0 }
 0x14e   :  { %v1309_v30 = vpop.f32.mrf.mxu1 }
 0x14f   :  { %v1268_v31 = vpop.f32.mrf.mxu0  ;;  %v1310_v50 = vadd.f32 %v1309_v30, %v1266_v29 }
 0x150   :  { %v1311_v32 = vpop.f32.mrf.mxu1 }
 0x151   :  { %v1270_v33 = vpop.f32.mrf.mxu0  ;;  %v1312_v36 = vadd.f32 %v1311_v32, %v1268_v31 }
 0x152   :  { %v1313_v26 = vpop.f32.mrf.mxu1 }
 0x153   :  { %v1272_v34 = vpop.f32.mrf.mxu0  ;;  %v1314_v51 = vadd.f32 %v1313_v26, %v1270_v33 }
 0x154   :  { %v1315_v37 = vpop.f32.mrf.mxu1 }
 0x155   :  { %v1316_v43 = vadd.f32 %v1315_v37, %v1272_v34  ;;  %v1529_v34 = vsub.s32 0, %v3759_v48 }
 0x16e   :  { %v3017_v41 = vpop.f32.mrf.mxu1 }
 0x170   :  { %v3018_v47 = vpop.f32.mrf.mxu1 }
 0x171   :  { %v3019_v44 = vadd.f32 %v3018_v47, %v3017_v41 }
 0x172   :  { %v3020_v49 = vpop.f32.mrf.mxu1 }
 0x174   :  { %v3021_v15 = vpop.f32.mrf.mxu1 }
 0x175   :  { %v3022_v0 = vadd.f32 %v3021_v15, %v3020_v49 }
 0x18d   :  { %v1352_v35 = vpop.f32.mrf.mxu0 }
 0x18e   :  { %v1353_v52 = vadd.f32 %v1352_v35, %v1310_v50  ;;  %v3039_v54 = vpop.f32.mrf.mxu1  ;;  %v1533_v35 = vsub.s32 1, %v3759_v48 }
 0x18f   :  { %v1354_v38 = vpop.f32.mrf.mxu0 }
 0x190   :  { %v1355_v39 = vadd.f32 %v1354_v38, %v1312_v36  ;;  %v3040_v56 = vpop.f32.mrf.mxu1  ;;  %v3674_v36 = vmov 1983009808   ;;  %v1525_v38 = vld [vmem:[%s3993_s4] sm:$0x3]  ;;  %s3675_s4 = smov 64  }
 0x191   :  { %v1356_v42 = vpop.f32.mrf.mxu0  ;;  %v3041_v40 = vadd.f32 %v3040_v56, %v3039_v54  ;;  %v1667_v37 = vunpack.c.l.s4 %v3674_v36  ;;  %v1534_v41 = vrot.slane %v1525_v38, %v1533_v35 }
 0x192   :  { %1484 = vst [vmem:[#allocation2] sm:$0xff] %v1355_v39  ;;  %v1357_v53 = vadd.f32 %v1356_v42, %v1314_v51  ;;  %v3042_v57 = vpop.f32.mrf.mxu1  ;;  %v1530_v39 = vrot.slane %v1525_v38, %v1529_v34 }
 0x193   :  { %v1358_v45 = vpop.f32.mrf.mxu0  ;;  %v1437_v1 = vadd.f32 %v3041_v40, %v3019_v44  ;;  %v1668_v42 = vunpack.c.0.s8 %v1667_v37 }
 0x194   :  { %v1359_v46 = vadd.f32 %v1358_v45, %v1316_v43  ;;  %v3043_v58 = vpop.f32.mrf.mxu1 }
 0x195   :  { %v3044_v61 = vadd.f32 %v3043_v58, %v3042_v57  ;;  %v3869_v49 = vsub.s32 %v1668_v42, %v3759_v48 }
 0x196   :  { %1485 = vst [vmem:[#allocation2 + $0x8] sm:$0xff] %v1359_v46 }
 0x197   :  { %v1440_v3 = vadd.f32 %v3044_v61, %v3022_v0 }
 0x19d   :  { %v1486_v18 = vld [vmem:[#allocation2 + $0x2] sm:$0xff]  ;;  %v1487_v19 = vld [vmem:[#allocation2 + $0xa] sm:$0x3f] }
 0x19e   :  { %v1488_v55 = vadd.f32 %v1486_v18, %v1353_v52  ;;  %v1489_v20 = vadd.f32 %v1487_v19, %v1357_v53 }
 0x1a0   :  { %1490 = vst [vmem:[#allocation2 + $0x2] sm:$0xff] %v1488_v55  ;;  %1491 = vst [vmem:[#allocation2 + $0xa] sm:$0x3f] %v1489_v20 }
 0x1a7   :  { %v1493_v11 = vld [vmem:[#allocation2 + $0x8] sm:$0x3f]  ;;  %v1492_v12 = vld [vmem:[#allocation2] sm:$0xff] }
 0x1ad   :  { %v3061_v59 = vpop.f32.mrf.mxu0 }
 0x1af   :  { %v3062_v60 = vpop.f32.mrf.mxu0 }
 0x1b0   :  { %v3063_v62 = vadd.f32 %v3062_v60, %v3061_v59 }
 0x1b1   :  { %v3064_v63 = vpop.f32.mrf.mxu0 }
 0x1b2   :  { %v1478_v4 = vadd.f32 %v3063_v62, %v1437_v1 }
 0x1b3   :  { %v3065_v2 = vpop.f32.mrf.mxu0 }
 0x1b4   :  { %v3066_v5 = vadd.f32 %v3065_v2, %v3064_v63  ;;  %v1497_v7 = vrot.slane %v1478_v4, 2 }
 0x1b6   :  { %v1481_v6 = vadd.f32 %v3066_v5, %v1440_v3 }
 0x1b8   :  { %v1498_v8 = vrot.slane %v1481_v6, 2 }
 0x1ba   :  { %v1499_v16 = vsel %vm1496_vm0, %v1497_v7, %v1498_v8  ;;  %v1503_v17 = vadd.f32 %v1498_v8, %v1493_v11 }
 0x1bb   :  { %v1502_v23 = vadd.f32 %v1499_v16, %v1492_v12 }
 0x1bc   :  { %1505 = vst [vmem:[#allocation2 + $0x8] sm:$0x3f] %v1503_v17 }
 0x1bd   :  { %1504 = vst [vmem:[#allocation2] sm:$0xff] %v1502_v23  ;;  %v1803_v30 = vpop.f32.mrf.mxu0 }
 0x1bf   :  { %v1805_v31 = vpop.f32.mrf.mxu0 }
 0x1c0   :  { %v1812_v26 = vcombine.low %v1803_v30, %v1805_v31 }
 0x1c1   :  { %v1807_v32 = vpop.f32.mrf.mxu0 }
 0x1c2   :  { %v1819_v40 = vrot.slane %v1812_v26, %v3869_v49 }
 0x1c3   :  { %v1507_v25 = vld [vmem:[#allocation2 + $0x8] sm:$0xff]  ;;  %v1808_v33 = vpop.f32.mrf.mxu0 }
 0x1c4   :  { %v1508_v29 = vpack.c.bf16 %v1507_v25, %v1502_v23 }
 0x1c6   :  { %1650 = vmatmul.mubr.bf16.vlgmr.msra.gmra.mxu1 %v1508_v29 }
 0x1c7   :  { %1870 = vmatpush1.bf16.msra.mxu1 %v3814_v10  ;;  %1893 = vmatprep.mubr.bf16.mxu1 %v3673_v27 }
 0x1c8   :  { %1871 = vmatprep.subr.bf16.mxu1 %v3818_v13 }
 0x1cb   :  { %1872 = vmatpush1.bf16.msra.mxu1 %v3820_v14 }
 0x1cc   :  { %1873 = vmatprep.subr.bf16.mxu1 %v3824_v21 }
 0x1cf   :  { %1874 = vmatpush1.bf16.msra.mxu1 %v3826_v22 }
 0x1d0   :  { %1875 = vmatprep.subr.bf16.mxu1 %v3828_v24 }
 0x1d3   :  { %1876 = vmatpush1.bf16.msra.mxu1 %v3833_v28 }
 0x1d4   :  { %2053 = vmatprep.subr.bf16.mxu1 %v3812_v9 }
 0x286   :  { %v1651_v43 = vpop.f32.mrf.mxu1 }
 0x287   :  { %v1652_v46 = vadd.f32 %v1651_v43, %v1530_v39 }
 0x288   :  { %v1653_v45 = vpop.f32.mrf.mxu1 }
 0x289   :  { %v1654_v47 = vadd.f32 %v1653_v45, %v1534_v41 }
 0x28a   :  { %v1655_v50 = vpop.f32.mrf.mxu1 }
 0x28b   :  { %v1664_v51 = vcombine.low %v1652_v46, %v1654_v47  ;;  %v1665_v52 = vcombine.high %v1652_v46, %v1654_v47  ;;  %v1656_v19 = vadd.f32 %v1655_v50, %v1530_v39 }
 0x28c   :  { %v1657_v53 = vpop.f32.mrf.mxu1 }
 0x28d   :  { %v1672_v15 = vrot.slane %v1664_v51, %v3869_v49  ;;  %v1679_v18 = vrot.slane %v1665_v52, %v3869_v49  ;;  %2947 = vst.sshfl [vmem:[#allocation3] sm:$0x33 pattern:$0x76325410] %v1664_v51  ;;  %v1658_v55 = vadd.f32 %v1657_v53, %v1534_v41 }
 0x28e   :  { %2948 = vst.sshfl [vmem:[#allocation3 + $0x8] sm:$0x33 pattern:$0x76325410] %v1665_v52 }
 0x28f   :  { %v1680_v20 = vcombine.high %v1672_v15, %v1672_v15  ;;  %v1681_v54 = vcombine.high %v1679_v18, %v1679_v18  ;;  %v1682_v56 = vcombine.low %v1656_v19, %v1658_v55  ;;  %v1683_v57 = vcombine.high %v1656_v19, %v1658_v55 }
 0x291   :  { %1709 = vst [vmem:[#allocation3 + $0x4] sm:$0xf] %v1680_v20  ;;  %1711 = vst [vmem:[#allocation3 + $0xc] sm:$0xf] %v1681_v54  ;;  %v1690_v58 = vrot.slane %v1682_v56, %v3869_v49  ;;  %v1697_v59 = vrot.slane %v1683_v57, %v3869_v49 }
 0x292   :  { %2949 = vst.sshfl [vmem:[#allocation3 + $0x10] sm:$0x33 pattern:$0x76325410] %v1682_v56 }
 0x293   :  { %2950 = vst.sshfl [vmem:[#allocation3 + $0x18] sm:$0x33 pattern:$0x76325410] %v1683_v57  ;;  %v1698_v60 = vcombine.high %v1690_v58, %v1690_v58  ;;  %v1699_v44 = vcombine.high %v1697_v59, %v1697_v59 }
 0x294   :  { %v1724_v61 = vld [vmem:[#allocation3] sm:$0xf] }
 0x295   :  { %v1821_v62 = vadd.f32 %v1819_v40, %v1724_v61  ;;  %1713 = vst [vmem:[#allocation3 + $0x14] sm:$0xf] %v1698_v60  ;;  %1715 = vst [vmem:[#allocation3 + $0x1c] sm:$0xf] %v1699_v44 }
 0x297   :  { %v2959_v63 = vmul.f32 -1.442695, %v1821_v62  ;;  %v1829_v0 = vrot.slane %v1821_v62, 2 }
 0x298   :  { %v1857_v41 = vld [vmem:[#allocation3 + $0x4] sm:$0xf] }
 0x299   :  { %3402 = vpow2.f32 %v2959_v63 }
 0x29a   :  { %3404 = vtanh.f32 %v1829_v0 }
 0x2a6   :  { %v3403_v1 = vpop.eup %3402 }
 0x2a7   :  { %v1825_v2 = vadd.f32 1.0, %v3403_v1  ;;  %v3405_v3 = vpop.eup %3404 }
 0x2a9   :  { %3406 = vrcp.f32 %v1825_v2  ;;  %v1949_v2 = vld [vmem:[#allocation3 + $0x8] sm:$0xf] }
 0x2b6   :  { %v3407_v4 = vpop.eup %3406 }
 0x2b7   :  { %v1843_v5 = vmul.f32 %v3407_v4, %v3405_v3  ;;  %v1842_v6 = vmul.f32 0.0, %v3407_v4 }
 0x2b9   :  { %1845 = vrot.lane.b32.xlu0 %v1843_v5, %s3675_s4 }
 0x2bd   :  { %1832 = vrot.lane.b32.xlu0 %v1821_v62, %s3675_s4 }
 0x32b   :  { %v1846_v7 = vpop.permute.xlu0 %1845 }
 0x32c   :  { %v1848_v8 = vadd.f32 %v1846_v7, %v1842_v6 }
 0x32e   :  { %3408 = vtanh.f32 %v1848_v8 }
 0x32f   :  { %v1833_v12 = vpop.permute.xlu0 %1832 }
 0x330   :  { %v1834_v16 = vrot.slane %v1833_v12, 2 }
 0x332   :  { %v2960_v17 = vmul.f32 -1.442695, %v1834_v16 }
 0x334   :  { %3410 = vpow2.f32 %v2960_v17 }
 0x33b   :  { %v3409_v11 = vpop.eup %3408 }
 0x33c   :  { %1851 = vrot.lane.b32.xlu1 %v3409_v11, %s3675_s4 }
 0x341   :  { %v3411_v23 = vpop.eup %3410 }
 0x342   :  { %v1839_v25 = vadd.f32 1.0, %v3411_v23 }
 0x344   :  { %3412 = vrcp.f32 %v1839_v25 }
 0x351   :  { %v3413_v29 = vpop.eup %3412 }
 0x3ae   :  { %v1852_v30 = vpop.permute.xlu1 %1851 }
 0x3af   :  { %v1854_v31 = vmul.f32 %v3413_v29, %v1852_v30 }
 0x3b1   :  { %v1855_v32 = vpack.c.bf16 %v1854_v31, %v1854_v31 }
 0x3b3   :  { %2961 = vmatmul.mubr.msk.bf16.vlgmr.msra.gmra.mxu1 %vm1765_vm1, %v1855_v32 }
 0x3b4   :  { %2054 = vmatpush1.bf16.msra.mxu1 %v3814_v10  ;;  %2077 = vmatprep.mubr.bf16.mxu1 %v3673_v27 }
 0x3b5   :  { %2055 = vmatprep.subr.bf16.mxu1 %v3818_v13 }
 0x3b8   :  { %2056 = vmatpush1.bf16.msra.mxu1 %v3820_v14 }
 0x3b9   :  { %2057 = vmatprep.subr.bf16.mxu1 %v3824_v21 }
 0x3bc   :  { %2058 = vmatpush1.bf16.msra.mxu1 %v3826_v22 }
 0x3bd   :  { %2059 = vmatprep.subr.bf16.mxu1 %v3828_v24 }
 0x3c0   :  { %2060 = vmatpush1.bf16.msra.mxu1 %v3833_v28 }
 0x3c1   :  { %2237 = vmatprep.subr.bf16.mxu1 %v3812_v9 }
 0x473   :  { %v1895_v33 = vpop.f32.mrf.mxu1 }
 0x475   :  { %v1897_v26 = vpop.f32.mrf.mxu1 }
 0x476   :  { %v1904_v36 = vcombine.low %v1895_v33, %v1897_v26 }
 0x477   :  { %v1899_v37 = vpop.f32.mrf.mxu1 }
 0x478   :  { %v1911_v38 = vrot.slane %v1904_v36, %v3869_v49 }
 0x479   :  { %v1900_v39 = vpop.f32.mrf.mxu1 }
 0x47a   :  { %v1913_v42 = vadd.f32 %v1911_v38, %v1857_v41 }
 0x47c   :  { %1924 = vrot.lane.b32.xlu0 %v1913_v42, %s3675_s4  ;;  %v2962_v43 = vmul.f32 -1.442695, %v1913_v42  ;;  %v1921_v45 = vrot.slane %v1913_v42, 2 }
 0x47e   :  { %3414 = vpow2.f32 %v2962_v43 }
 0x47f   :  { %3416 = vtanh.f32 %v1921_v45 }
 0x48b   :  { %v3415_v46 = vpop.eup %3414 }
 0x48c   :  { %v1917_v47 = vadd.f32 1.0, %v3415_v46  ;;  %v3417_v50 = vpop.eup %3416 }
 0x48e   :  { %3418 = vrcp.f32 %v1917_v47  ;;  %v2041_v47 = vld [vmem:[#allocation3 + $0xc] sm:$0xf] }
 0x49b   :  { %v3419_v51 = vpop.eup %3418 }
 0x49c   :  { %v1935_v52 = vmul.f32 %v3419_v51, %v3417_v50  ;;  %v1934_v53 = vmul.f32 %v3419_v51, %v1848_v8 }
 0x49e   :  { %1937 = vrot.lane.b32.xlu1 %v1935_v52, %s3675_s4 }
 0x4ee   :  { %v1925_v55 = vpop.permute.xlu0 %1924 }
 0x4ef   :  { %v1926_v20 = vrot.slane %v1925_v55, 2 }
 0x4f1   :  { %v2963_v54 = vmul.f32 -1.442695, %v1926_v20 }
 0x510   :  { %v1938_v15 = vpop.permute.xlu1 %1937 }
 0x511   :  { %v1940_v18 = vadd.f32 %v1938_v15, %v1934_v53 }
 0x513   :  { %3420 = vtanh.f32 %v1940_v18 }
 0x514   :  { %3422 = vpow2.f32 %v2963_v54 }
 0x520   :  { %v3421_v19 = vpop.eup %3420 }
 0x521   :  { %1943 = vrot.lane.b32.xlu1 %v3421_v19, %s3675_s4  ;;  %v3423_v56 = vpop.eup %3422 }
 0x522   :  { %v1931_v57 = vadd.f32 1.0, %v3423_v56 }
 0x524   :  { %3424 = vrcp.f32 %v1931_v57 }
 0x531   :  { %v3425_v58 = vpop.eup %3424 }
 0x593   :  { %v1944_v59 = vpop.permute.xlu1 %1943 }
 0x594   :  { %v1946_v40 = vmul.f32 %v3425_v58, %v1944_v59 }
 0x596   :  { %v1947_v60 = vpack.c.bf16 %v1946_v40, %v1946_v40 }
 0x598   :  { %2964 = vmatmul.mubr.msk.bf16.vlgmr.msra.gmra.mxu0 %vm1765_vm1, %v1947_v60 }
 0x599   :  { %2146 = vmatpush1.bf16.msra.mxu0 %v3814_v10  ;;  %2169 = vmatprep.mubr.bf16.mxu0 %v3673_v27 }
 0x59a   :  { %2147 = vmatprep.subr.bf16.mxu0 %v3818_v13 }
 0x59d   :  { %2148 = vmatpush1.bf16.msra.mxu0 %v3820_v14 }
 0x59e   :  { %2149 = vmatprep.subr.bf16.mxu0 %v3824_v21 }
 0x5a1   :  { %2150 = vmatpush1.bf16.msra.mxu0 %v3826_v22 }
 0x5a2   :  { %2151 = vmatprep.subr.bf16.mxu0 %v3828_v24 }
 0x5a5   :  { %2152 = vmatpush1.bf16.msra.mxu0 %v3833_v28 }
 0x5a6   :  { %2329 = vmatprep.subr.bf16.mxu0 %v3812_v9 }
 0x658   :  { %v1987_v44 = vpop.f32.mrf.mxu0 }
 0x65a   :  { %v1989_v61 = vpop.f32.mrf.mxu0 }
 0x65b   :  { %v1996_v62 = vcombine.low %v1987_v44, %v1989_v61 }
 0x65c   :  { %v1991_v63 = vpop.f32.mrf.mxu0 }
 0x65d   :  { %v2003_v0 = vrot.slane %v1996_v62, %v3869_v49 }
 0x65e   :  { %v1992_v1 = vpop.f32.mrf.mxu0 }
 0x65f   :  { %v2005_v3 = vadd.f32 %v2003_v0, %v1949_v2 }
 0x661   :  { %2016 = vrot.lane.b32.xlu1 %v2005_v3, %s3675_s4  ;;  %v2965_v4 = vmul.f32 -1.442695, %v2005_v3  ;;  %v2013_v5 = vrot.slane %v2005_v3, 2 }
 0x663   :  { %3426 = vpow2.f32 %v2965_v4 }
 0x664   :  { %3428 = vtanh.f32 %v2013_v5 }
 0x670   :  { %v3427_v6 = vpop.eup %3426 }
 0x671   :  { %v2009_v7 = vadd.f32 1.0, %v3427_v6  ;;  %v3429_v8 = vpop.eup %3428  ;;  %v2133_v6 = vld [vmem:[#allocation3 + $0x10] sm:$0xf] }
 0x673   :  { %3430 = vrcp.f32 %v2009_v7 }
 0x680   :  { %v3431_v11 = vpop.eup %3430 }
 0x681   :  { %v2027_v12 = vmul.f32 %v3431_v11, %v3429_v8  ;;  %v2026_v16 = vmul.f32 %v3431_v11, %v1940_v18 }
 0x683   :  { %2029 = vrot.lane.b32.xlu0 %v2027_v12, %s3675_s4 }
 0x6d3   :  { %v2017_v29 = vpop.permute.xlu1 %2016 }
 0x6d4   :  { %v2018_v30 = vrot.slane %v2017_v29, 2 }
 0x6d6   :  { %v2966_v31 = vmul.f32 -1.442695, %v2018_v30 }
 0x6f5   :  { %v2030_v17 = vpop.permute.xlu0 %2029 }
 0x6f6   :  { %v2032_v23 = vadd.f32 %v2030_v17, %v2026_v16 }
 0x6f8   :  { %3432 = vtanh.f32 %v2032_v23 }
 0x6f9   :  { %3434 = vpow2.f32 %v2966_v31 }
 0x705   :  { %v3433_v25 = vpop.eup %3432 }
 0x706   :  { %2035 = vrot.lane.b32.xlu0 %v3433_v25, %s3675_s4  ;;  %v3435_v32 = vpop.eup %3434 }
 0x707   :  { %v2023_v33 = vadd.f32 1.0, %v3435_v32 }
 0x709   :  { %3436 = vrcp.f32 %v2023_v33 }
 0x716   :  { %v3437_v26 = vpop.eup %3436 }
 0x778   :  { %v2036_v36 = vpop.permute.xlu0 %2035 }
 0x779   :  { %v2038_v37 = vmul.f32 %v3437_v26, %v2036_v36 }
 0x77b   :  { %v2039_v38 = vpack.c.bf16 %v2038_v37, %v2038_v37 }
 0x77d   :  { %2967 = vmatmul.mubr.msk.bf16.vlgmr.msra.gmra.mxu1 %vm1765_vm1, %v2039_v38 }
 0x77e   :  { %2238 = vmatpush1.bf16.msra.mxu1 %v3814_v10  ;;  %2261 = vmatprep.mubr.bf16.mxu1 %v3673_v27 }
 0x77f   :  { %2239 = vmatprep.subr.bf16.mxu1 %v3818_v13 }
 0x782   :  { %2240 = vmatpush1.bf16.msra.mxu1 %v3820_v14 }
 0x783   :  { %2241 = vmatprep.subr.bf16.mxu1 %v3824_v21 }
 0x786   :  { %2242 = vmatpush1.bf16.msra.mxu1 %v3826_v22 }
 0x787   :  { %2243 = vmatprep.subr.bf16.mxu1 %v3828_v24 }
 0x78a   :  { %2244 = vmatpush1.bf16.msra.mxu1 %v3833_v28 }
 0x78b   :  { %2421 = vmatprep.subr.bf16.mxu1 %v3812_v9 }
 0x83d   :  { %v2079_v39 = vpop.f32.mrf.mxu1 }
 0x83f   :  { %v2081_v41 = vpop.f32.mrf.mxu1 }
 0x840   :  { %v2088_v42 = vcombine.low %v2079_v39, %v2081_v41 }
 0x841   :  { %v2083_v43 = vpop.f32.mrf.mxu1 }
 0x842   :  { %v2095_v45 = vrot.slane %v2088_v42, %v3869_v49 }
 0x843   :  { %v2084_v46 = vpop.f32.mrf.mxu1 }
 0x844   :  { %v2097_v50 = vadd.f32 %v2095_v45, %v2041_v47 }
 0x846   :  { %2108 = vrot.lane.b32.xlu0 %v2097_v50, %s3675_s4  ;;  %v2968_v51 = vmul.f32 -1.442695, %v2097_v50  ;;  %v2105_v52 = vrot.slane %v2097_v50, 2 }
 0x848   :  { %3438 = vpow2.f32 %v2968_v51 }
 0x849   :  { %3440 = vtanh.f32 %v2105_v52  ;;  %v2225_v52 = vld [vmem:[#allocation3 + $0x14] sm:$0xf] }
 0x855   :  { %v3439_v53 = vpop.eup %3438 }
 0x856   :  { %v2101_v15 = vadd.f32 1.0, %v3439_v53  ;;  %v3441_v18 = vpop.eup %3440 }
 0x858   :  { %3442 = vrcp.f32 %v2101_v15 }
 0x865   :  { %v3443_v9 = vpop.eup %3442 }
 0x866   :  { %v2119_v19 = vmul.f32 %v3443_v9, %v3441_v18  ;;  %v2118_v55 = vmul.f32 %v3443_v9, %v2032_v23 }
 0x868   :  { %2121 = vrot.lane.b32.xlu1 %v2119_v19, %s3675_s4 }
 0x8b8   :  { %v2109_v57 = vpop.permute.xlu0 %2108 }
 0x8b9   :  { %v2110_v58 = vrot.slane %v2109_v57, 2 }
 0x8bb   :  { %v2969_v59 = vmul.f32 -1.442695, %v2110_v58 }
 0x8da   :  { %v2122_v20 = vpop.permute.xlu1 %2121 }
 0x8db   :  { %v2124_v54 = vadd.f32 %v2122_v20, %v2118_v55  ;;  %v3380_v55 = vld [vmem:[#allocation12 + $0x74] ss:$8 sps:$4 sm:$0xff]  }
 0x8dd   :  { %3444 = vtanh.f32 %v2124_v54 }
 0x8de   :  { %3446 = vpow2.f32 %v2969_v59 }
 0x8ea   :  { %v3445_v56 = vpop.eup %3444 }
 0x8eb   :  { %2127 = vrot.lane.b32.xlu1 %v3445_v56, %s3675_s4  ;;  %v3447_v40 = vpop.eup %3446 }
 0x8ec   :  { %v2115_v60 = vadd.f32 1.0, %v3447_v40 }
 0x8ee   :  { %3448 = vrcp.f32 %v2115_v60 }
 0x8fb   :  { %v3449_v44 = vpop.eup %3448 }
 0x95d   :  { %v2128_v61 = vpop.permute.xlu1 %2127 }
 0x95e   :  { %v2130_v62 = vmul.f32 %v3449_v44, %v2128_v61  ;;  %v3378_v61 = vld [vmem:[#allocation12 + $0x70] ss:$8 sps:$4 sm:$0xff]  }
 0x960   :  { %v2131_v63 = vpack.c.bf16 %v2130_v62, %v2130_v62 }
 0x962   :  { %2970 = vmatmul.mubr.msk.bf16.vlgmr.msra.gmra.mxu0 %vm1765_vm1, %v2131_v63  ;;  %v3383_v63 = vld [vmem:[#allocation12 + $0x64] ss:$8 sps:$4 sm:$0xff]  }
 0x963   :  { %2330 = vmatpush1.bf16.msra.mxu0 %v3814_v10  ;;  %2353 = vmatprep.mubr.bf16.mxu0 %v3673_v27 }
 0x964   :  { %2331 = vmatprep.subr.bf16.mxu0 %v3818_v13 }
 0x967   :  { %2332 = vmatpush1.bf16.msra.mxu0 %v3820_v14 }
 0x968   :  { %2333 = vmatprep.subr.bf16.mxu0 %v3824_v21 }
 0x96b   :  { %2334 = vmatpush1.bf16.msra.mxu0 %v3826_v22 }
 0x96c   :  { %2335 = vmatprep.subr.bf16.mxu0 %v3828_v24 }
 0x96f   :  { %2336 = vmatpush1.bf16.msra.mxu0 %v3833_v28 }
 0x970   :  { %2610 = vmatprep.subr.bf16.mxu0 %v3380_v55 }
 0xa22   :  { %v2171_v0 = vpop.f32.mrf.mxu0 }
 0xa24   :  { %v2173_v1 = vpop.f32.mrf.mxu0 }
 0xa25   :  { %v2180_v2 = vcombine.low %v2171_v0, %v2173_v1  ;;  %v3381_v0 = vld [vmem:[#allocation12 + $0x60] ss:$8 sps:$4 sm:$0xff]   ;;  %v3386_v1 = vld [vmem:[#allocation12 + $0x54] ss:$8 sps:$4 sm:$0xff]  }
 0xa26   :  { %v2175_v3 = vpop.f32.mrf.mxu0 }
 0xa27   :  { %v2187_v4 = vrot.slane %v2180_v2, %v3869_v49  ;;  %v3384_v2 = vld [vmem:[#allocation12 + $0x50] ss:$8 sps:$4 sm:$0xff]   ;;  %v3389_v3 = vld [vmem:[#allocation12 + $0x44] ss:$8 sps:$4 sm:$0xff]  }
 0xa28   :  { %v2176_v5 = vpop.f32.mrf.mxu0 }
 0xa29   :  { %v2189_v7 = vadd.f32 %v2187_v4, %v2133_v6  ;;  %v3387_v4 = vld [vmem:[#allocation12 + $0x40] ss:$8 sps:$4 sm:$0xff]   ;;  %v3392_v5 = vld [vmem:[#allocation12 + $0x34] ss:$8 sps:$4 sm:$0xff]   ;;  %v3390_v6 = vld [vmem:[#allocation12 + $0x30] ss:$8 sps:$4 sm:$0xff]  }
 0xa2b   :  { %2200 = vrot.lane.b32.xlu1 %v2189_v7, %s3675_s4  ;;  %v2971_v8 = vmul.f32 -1.442695, %v2189_v7  ;;  %v2197_v11 = vrot.slane %v2189_v7, 2  ;;  %v3395_v7 = vld [vmem:[#allocation12 + $0x24] ss:$8 sps:$4 sm:$0xff]  }
 0xa2d   :  { %3450 = vpow2.f32 %v2971_v8  ;;  %v3393_v8 = vld [vmem:[#allocation12 + $0x20] ss:$8 sps:$4 sm:$0xff]  }
 0xa2e   :  { %3452 = vtanh.f32 %v2197_v11  ;;  %v3398_v11 = vld [vmem:[#allocation12 + $0x14] ss:$8 sps:$4 sm:$0xff]  }
 0xa3a   :  { %v3451_v12 = vpop.eup %3450 }
 0xa3b   :  { %v2193_v16 = vadd.f32 1.0, %v3451_v12  ;;  %v3453_v17 = vpop.eup %3452  ;;  %v3401_v12 = vld [vmem:[#allocation12 + $0x4] ss:$8 sps:$4 sm:$0xff]  }
 0xa3d   :  { %3454 = vrcp.f32 %v2193_v16  ;;  %v3399_v16 = vld [vmem:[#allocation12] ss:$8 sps:$4 sm:$0xff]  }
 0xa4a   :  { %v3455_v23 = vpop.eup %3454 }
 0xa4b   :  { %v2211_v25 = vmul.f32 %v3455_v23, %v3453_v17  ;;  %v2210_v29 = vmul.f32 %v3455_v23, %v2124_v54  ;;  %v2500_v17 = vld [vmem:[#allocation2 + $0xe] sm:$0x3] }
 0xa4c   :  { %v2501_v23 = vpack.c.bf16 %v2500_v17, %v2500_v17  ;;  %v2687_v17 = vld [vmem:[#allocation13 + $0x60] sm:$0xff] }
 0xa4d   :  { %2213 = vrot.lane.b32.xlu0 %v2211_v25, %s3675_s4 }
 0xa9d   :  { %v2201_v33 = vpop.permute.xlu1 %2200 }
 0xa9e   :  { %v2202_v26 = vrot.slane %v2201_v33, 2 }
 0xaa0   :  { %v2972_v36 = vmul.f32 -1.442695, %v2202_v26  ;;  %v2317_v26 = vld [vmem:[#allocation3 + $0x18] sm:$0xf] }
 0xabf   :  { %v2214_v30 = vpop.permute.xlu0 %2213 }
 0xac0   :  { %v2216_v31 = vadd.f32 %v2214_v30, %v2210_v29 }
 0xac2   :  { %3456 = vtanh.f32 %v2216_v31 }
 0xac3   :  { %3458 = vpow2.f32 %v2972_v36 }
 0xacf   :  { %v3457_v32 = vpop.eup %3456 }
 0xad0   :  { %2219 = vrot.lane.b32.xlu0 %v3457_v32, %s3675_s4  ;;  %v3459_v37 = vpop.eup %3458 }
 0xad1   :  { %v2207_v38 = vadd.f32 1.0, %v3459_v37 }
 0xad3   :  { %3460 = vrcp.f32 %v2207_v38 }
 0xae0   :  { %v3461_v39 = vpop.eup %3460 }
 0xb42   :  { %v2220_v41 = vpop.permute.xlu0 %2219 }
 0xb43   :  { %v2222_v42 = vmul.f32 %v3461_v39, %v2220_v41 }
 0xb45   :  { %v2223_v43 = vpack.c.bf16 %v2222_v42, %v2222_v42  ;;  %v2518_v42 = vld [vmem:[%s3995_s6] sm:$0x3] }
 0xb47   :  { %2973 = vmatmul.mubr.msk.bf16.vlgmr.msra.gmra.mxu1 %vm1765_vm1, %v2223_v43  ;;  %v2523_v43 = vrot.slane %v2518_v42, %v1529_v34 }
 0xb48   :  { %2422 = vmatpush1.bf16.msra.mxu1 %v3814_v10  ;;  %2445 = vmatprep.mubr.bf16.mxu1 %v3673_v27 }
 0xb49   :  { %2423 = vmatprep.subr.bf16.mxu1 %v3818_v13 }
 0xb4c   :  { %2424 = vmatpush1.bf16.msra.mxu1 %v3820_v14 }
 0xb4d   :  { %2425 = vmatprep.subr.bf16.mxu1 %v3824_v21 }
 0xb50   :  { %2426 = vmatpush1.bf16.msra.mxu1 %v3826_v22 }
 0xb51   :  { %2427 = vmatprep.subr.bf16.mxu1 %v3828_v24 }
 0xb54   :  { %2428 = vmatpush1.bf16.msra.mxu1 %v3833_v28 }
 0xc07   :  { %v2263_v45 = vpop.f32.mrf.mxu1 }
 0xc09   :  { %v2265_v46 = vpop.f32.mrf.mxu1 }
 0xc0a   :  { %v2272_v47 = vcombine.low %v2263_v45, %v2265_v46 }
 0xc0b   :  { %v2267_v50 = vpop.f32.mrf.mxu1 }
 0xc0c   :  { %v2279_v10 = vrot.slane %v2272_v47, %v3869_v49 }
 0xc0d   :  { %v2268_v51 = vpop.f32.mrf.mxu1 }
 0xc0e   :  { %v2281_v53 = vadd.f32 %v2279_v10, %v2225_v52 }
 0xc10   :  { %2292 = vrot.lane.b32.xlu0 %v2281_v53, %s3675_s4  ;;  %v2974_v13 = vmul.f32 -1.442695, %v2281_v53  ;;  %v2289_v14 = vrot.slane %v2281_v53, 2 }
 0xc12   :  { %3462 = vpow2.f32 %v2974_v13 }
 0xc13   :  { %3464 = vtanh.f32 %v2289_v14  ;;  %v2527_v14 = vrot.slane %v2518_v42, %v1533_v35 }
 0xc1f   :  { %v3463_v21 = vpop.eup %3462 }
 0xc20   :  { %v2285_v22 = vadd.f32 1.0, %v3463_v21  ;;  %v3465_v24 = vpop.eup %3464 }
 0xc22   :  { %3466 = vrcp.f32 %v2285_v22 }
 0xc2f   :  { %v3467_v28 = vpop.eup %3466 }
 0xc30   :  { %v2303_v15 = vmul.f32 %v3467_v28, %v3465_v24  ;;  %v2302_v18 = vmul.f32 %v3467_v28, %v2216_v31 }
 0xc32   :  { %2305 = vrot.lane.b32.xlu1 %v2303_v15, %s3675_s4 }
 0xc82   :  { %v2293_v54 = vpop.permute.xlu0 %2292 }
 0xc83   :  { %v2294_v56 = vrot.slane %v2293_v54, 2 }
 0xc85   :  { %v2975_v57 = vmul.f32 -1.442695, %v2294_v56 }
 0xca4   :  { %v2306_v9 = vpop.permute.xlu1 %2305 }
 0xca5   :  { %v3946_v19 = vadd.f32 %v2306_v9, %v2302_v18 }
 0xca7   :  { %3468 = vtanh.f32 %v3946_v19 }
 0xca8   :  { %3470 = vpow2.f32 %v2975_v57 }
 0xcb4   :  { %v3469_v20 = vpop.eup %3468 }
 0xcb5   :  { %2311 = vrot.lane.b32.xlu1 %v3469_v20, %s3675_s4  ;;  %v3471_v58 = vpop.eup %3470 }
 0xcb6   :  { %v2299_v59 = vadd.f32 1.0, %v3471_v58 }
 0xcb8   :  { %3472 = vrcp.f32 %v2299_v59 }
 0xcc5   :  { %v3473_v40 = vpop.eup %3472 }
 0xd27   :  { %v2312_v60 = vpop.permute.xlu1 %2311 }
 0xd28   :  { %v2314_v44 = vmul.f32 %v3473_v40, %v2312_v60 }
 0xd2a   :  { %v2315_v62 = vpack.c.bf16 %v2314_v44, %v2314_v44 }
 0xd2c   :  { %2976 = vmatmul.mubr.msk.bf16.vlgmr.msra.gmra.mxu0 %vm1765_vm1, %v2315_v62 }
 0xd2d   :  { %2611 = vmatpush1.bf16.msra.mxu0 %v3378_v61  ;;  %2642 = vmatprep.mubr.bf16.mxu0 %v3673_v27  ;;  %v3396_v27 = vld [vmem:[#allocation12 + $0x10] ss:$8 sps:$4 sm:$0xff]  }
 0xd2e   :  { %2612 = vmatprep.subr.bf16.mxu0 %v3383_v63 }
 0xd31   :  { %2613 = vmatpush1.bf16.msra.mxu0 %v3381_v0 }
 0xd32   :  { %2614 = vmatprep.subr.bf16.mxu0 %v3386_v1  ;;  %v2409_v1 = vld [vmem:[#allocation3 + $0x1c] sm:$0xf] }
 0xd35   :  { %2615 = vmatpush1.bf16.msra.mxu0 %v3384_v2 }
 0xd36   :  { %2616 = vmatprep.subr.bf16.mxu0 %v3389_v3 }
 0xd39   :  { %2617 = vmatpush1.bf16.msra.mxu0 %v3387_v4 }
 0xd3a   :  { %2618 = vmatprep.subr.bf16.mxu0 %v3392_v5 }
 0xd3d   :  { %2619 = vmatpush1.bf16.msra.mxu0 %v3390_v6 }
 0xd3e   :  { %2620 = vmatprep.subr.bf16.mxu0 %v3395_v7 }
 0xd41   :  { %2621 = vmatpush1.bf16.msra.mxu0 %v3393_v8 }
 0xd42   :  { %2622 = vmatprep.subr.bf16.mxu0 %v3398_v11 }
 0xd45   :  { %2623 = vmatpush1.bf16.msra.mxu0 %v3396_v27  ;;  %v2690_v27 = vld [vmem:[#allocation13 + $0x78] sm:$0xff] }
 0xd46   :  { %2624 = vmatprep.subr.bf16.mxu0 %v3401_v12  ;;  %v2689_v12 = vld [vmem:[#allocation13 + $0x70] sm:$0xff] }
 0xd49   :  { %2625 = vmatpush1.bf16.msra.mxu0 %v3399_v16  ;;  %v2688_v16 = vld [vmem:[#allocation13 + $0x68] sm:$0xff] }
 0xd4c   :  { %2643 = vmatmul.mubr.bf16.vlgmr.msra.gmra.mxu0 %v2501_v23  ;;  %v2686_v23 = vld [vmem:[#allocation13 + $0x58] sm:$0xff] }
 0xdec   :  { %v2355_v25 = vpop.f32.mrf.mxu0 }
 0xdee   :  { %v2357_v29 = vpop.f32.mrf.mxu0 }
 0xdef   :  { %v2364_v30 = vcombine.low %v2355_v25, %v2357_v29  ;;  %v2685_v25 = vld [vmem:[#allocation13 + $0x50] sm:$0xff]  ;;  %v2684_v29 = vld [vmem:[#allocation13 + $0x48] sm:$0xff] }
 0xdf0   :  { %v2359_v31 = vpop.f32.mrf.mxu0 }
 0xdf1   :  { %v2371_v32 = vrot.slane %v2364_v30, %v3869_v49  ;;  %v2683_v30 = vld [vmem:[#allocation13 + $0x40] sm:$0xff]  ;;  %v2682_v31 = vld [vmem:[#allocation13 + $0x38] sm:$0xff] }
 0xdf2   :  { %v2360_v33 = vpop.f32.mrf.mxu0 }
 0xdf3   :  { %v2373_v36 = vadd.f32 %v2371_v32, %v2317_v26  ;;  %v2681_v32 = vld [vmem:[#allocation13 + $0x30] sm:$0xff]  ;;  %v2680_v33 = vld [vmem:[#allocation13 + $0x28] sm:$0xff]  ;;  %v2679_v26 = vld [vmem:[#allocation13 + $0x20] sm:$0xff] }
 0xdf5   :  { %2384 = vrot.lane.b32.xlu1 %v2373_v36, %s3675_s4  ;;  %v2977_v37 = vmul.f32 -1.442695, %v2373_v36  ;;  %v2381_v38 = vrot.slane %v2373_v36, 2  ;;  %v2678_v36 = vld [vmem:[#allocation13 + $0x18] sm:$0xff] }
 0xdf7   :  { %3474 = vpow2.f32 %v2977_v37  ;;  %v2677_v37 = vld [vmem:[#allocation13 + $0x10] sm:$0xff] }
 0xdf8   :  { %3476 = vtanh.f32 %v2381_v38 }
 0xe04   :  { %v3475_v39 = vpop.eup %3474 }
 0xe05   :  { %v2377_v41 = vadd.f32 1.0, %v3475_v39  ;;  %v3477_v52 = vpop.eup %3476 }
 0xe07   :  { %3478 = vrcp.f32 %v2377_v41 }
 0xe0c   :  { %v2644_v45 = vpop.f32.mrf.mxu0 }
 0xe0d   :  { %v2645_v46 = vadd.f32 %v2644_v45, %v2523_v43 }
 0xe0e   :  { %v2646_v47 = vpop.f32.mrf.mxu0 }
 0xe0f   :  { %v2998_v50 = vmul.f32 -1.442695, %v2645_v46  ;;  %v3962_v21 = vadd.f32 %v2646_v47, %v2527_v14 }
 0xe10   :  { %v2648_v10 = vpop.f32.mrf.mxu0 }
 0xe11   :  { %3480 = vpow2.f32 %v2998_v50  ;;  %v2999_v38 = vmul.f32 -1.442695, %v3962_v21  ;;  %v2676_v50 = vld [vmem:[#allocation13 + $0x8] sm:$0xff]  ;;  %v2675_v10 = vld [vmem:[#allocation13] sm:$0xff] }
 0xe12   :  { %v2649_v51 = vpop.f32.mrf.mxu0  ;;  %3482 = vtanh.f32 %v3962_v21 }
 0xe14   :  { %v3479_v53 = vpop.eup %3478 }
 0xe15   :  { %v2395_v13 = vmul.f32 %v3479_v53, %v3477_v52  ;;  %v2394_v18 = vmul.f32 %v3479_v53, %v3946_v19 }
 0xe17   :  { %2397 = vrot.lane.b32.xlu0 %v2395_v13, %s3675_s4 }
 0xe1e   :  { %v3481_v22 = vpop.eup %3480 }
 0xe1f   :  { %v2654_v24 = vadd.f32 1.0, %v3481_v22  ;;  %v3483_v34 = vpop.eup %3482 }
 0xe21   :  { %3484 = vrcp.f32 %v2654_v24 }
 0xe2e   :  { %v3965_v28 = vpop.eup %3484 }
 0xe2f   :  { %v2665_v15 = vmul.f32 %v3965_v28, %v3483_v34  ;;  %v2664_v46 = vmul.f32 0.0, %v3965_v28 }
 0xe67   :  { %v2385_v35 = vpop.permute.xlu1 %2384 }
 0xe68   :  { %v2386_v20 = vrot.slane %v2385_v35, 2 }
 0xe6a   :  { %v2978_v54 = vmul.f32 -1.442695, %v2386_v20 }
 0xe89   :  { %v2398_v9 = vpop.permute.xlu0 %2397 }
 0xe8a   :  { %v3969_v55 = vadd.f32 %v2398_v9, %v2394_v18 }
 0xe8c   :  { %3486 = vtanh.f32 %v3969_v55 }
 0xe8d   :  { %3488 = vpow2.f32 %v2978_v54 }
 0xe99   :  { %v3487_v48 = vpop.eup %3486 }
 0xe9a   :  { %2403 = vrot.lane.b32.xlu0 %v3487_v48, %s3675_s4  ;;  %v3489_v56 = vpop.eup %3488  ;;  %v3000_v48 = vld [vmem:[%s3997_s8] ss:$0 sm:$0xff] }
 0xe9b   :  { %v2391_v57 = vadd.f32 1.0, %v3489_v56 }
 0xe9d   :  { %3490 = vrcp.f32 %v2391_v57 }
 0xeaa   :  { %v3491_v58 = vpop.eup %3490 }
 0xf0c   :  { %v2404_v59 = vpop.permute.xlu0 %2403 }
 0xf0d   :  { %v2406_v40 = vmul.f32 %v3491_v58, %v2404_v59 }
 0xf0f   :  { %v2407_v60 = vpack.c.bf16 %v2406_v40, %v2406_v40 }
 0xf11   :  { %2979 = vmatmul.mubr.msk.bf16.vlgmr.msra.gmra.mxu1 %vm1765_vm1, %v2407_v60 }
 0xfd1   :  { %v2447_v19 = vpop.f32.mrf.mxu1 }
 0xfd3   :  { %v2449_v44 = vpop.f32.mrf.mxu1 }
 0xfd4   :  { %v2456_v61 = vcombine.low %v2447_v19, %v2449_v44 }
 0xfd5   :  { %v2451_v62 = vpop.f32.mrf.mxu1 }
 0xfd6   :  { %v2463_v63 = vrot.slane %v2456_v61, %v3869_v49  ;;  %v3676_v49 = vmov 0.0  }
 0xfd7   :  { %v2452_v0 = vpop.f32.mrf.mxu1  ;;  %3084 = vmatprep.subr.mxu1 %v3676_v49  ;;  %3116 = vmatprep.mubr.msk.f32.mxu1 %vm3677_vm2, %v3676_v49 }
 0xfd8   :  { %v2465_v2 = vadd.f32 %v2463_v63, %v2409_v1  ;;  %3085 = vmatpush3.msra.mxu1 %v2690_v27 }
 0xfd9   :  { %3086 = vmatprep.subr.mxu1 %v3676_v49 }
 0xfda   :  { %2476 = vrot.lane.b32.xlu0 %v2465_v2, %s3675_s4  ;;  %v2980_v3 = vmul.f32 -1.442695, %v2465_v2  ;;  %v2473_v4 = vrot.slane %v2465_v2, 2  ;;  %3087 = vmatpush3.msra.mxu1 %v2689_v12 }
 0xfdb   :  { %3088 = vmatprep.subr.mxu1 %v3676_v49 }
 0xfdc   :  { %3492 = vpow2.f32 %v2980_v3  ;;  %3089 = vmatpush3.msra.mxu1 %v2688_v16 }
 0xfdd   :  { %3494 = vtanh.f32 %v2473_v4  ;;  %3090 = vmatprep.subr.mxu1 %v3676_v49 }
 0xfde   :  { %3091 = vmatpush3.msra.mxu1 %v2687_v17 }
 0xfdf   :  { %3092 = vmatprep.subr.mxu1 %v3676_v49 }
 0xfe0   :  { %3093 = vmatpush3.msra.mxu1 %v2686_v23 }
 0xfe1   :  { %3094 = vmatprep.subr.mxu1 %v3676_v49 }
 0xfe2   :  { %3095 = vmatpush3.msra.mxu1 %v2685_v25 }
 0xfe3   :  { %3096 = vmatprep.subr.mxu1 %v3676_v49 }
 0xfe4   :  { %3097 = vmatpush3.msra.mxu1 %v2684_v29 }
 0xfe5   :  { %3098 = vmatprep.subr.mxu1 %v3676_v49 }
 0xfe6   :  { %3099 = vmatpush3.msra.mxu1 %v2683_v30 }
 0xfe7   :  { %3100 = vmatprep.subr.mxu1 %v3676_v49 }
 0xfe8   :  { %3101 = vmatpush3.msra.mxu1 %v2682_v31 }
 0xfe9   :  { %v3493_v5 = vpop.eup %3492  ;;  %3102 = vmatprep.subr.mxu1 %v3676_v49 }
 0xfea   :  { %v2469_v6 = vadd.f32 1.0, %v3493_v5  ;;  %v3495_v7 = vpop.eup %3494  ;;  %3103 = vmatpush3.msra.mxu1 %v2681_v32 }
 0xfeb   :  { %3104 = vmatprep.subr.mxu1 %v3676_v49 }
 0xfec   :  { %3496 = vrcp.f32 %v2469_v6  ;;  %3105 = vmatpush3.msra.mxu1 %v2680_v33 }
 0xfed   :  { %3106 = vmatprep.subr.mxu1 %v3676_v49  ;;  %3498 = vpow2.f32 %v2999_v38 }
 0xfee   :  { %3107 = vmatpush3.msra.mxu1 %v2679_v26 }
 0xfef   :  { %3108 = vmatprep.subr.mxu1 %v3676_v49 }
 0xff0   :  { %3109 = vmatpush3.msra.mxu1 %v2678_v36 }
 0xff1   :  { %3110 = vmatprep.subr.mxu1 %v3676_v49 }
 0xff2   :  { %3111 = vmatpush3.msra.mxu1 %v2677_v37 }
 0xff3   :  { %3112 = vmatprep.subr.mxu1 %v3676_v49 }
 0xff4   :  { %3113 = vmatpush3.msra.mxu1 %v2676_v50 }
 0xff5   :  { %3114 = vmatprep.subr.mxu1 %v3676_v49 }
 0xff6   :  { %3115 = vmatpush3.msra.mxu1 %v2675_v10 }
 0xff9   :  { %v3497_v8 = vpop.eup %3496 }
 0xffa   :  { %v2487_v11 = vmul.f32 %v3497_v8, %v3495_v7  ;;  %v3499_v39 = vpop.eup %3498  ;;  %v2486_v41 = vmul.f32 %v3497_v8, %v3969_v55 }
 0xffb   :  { %v2661_v45 = vadd.f32 1.0, %v3499_v39 }
 0xffc   :  { %2489 = vrot.lane.b32.xlu1 %v2487_v11, %s3675_s4 }
0x1000   :  { %2667 = vrot.lane.b32.xlu1 %v2665_v15, %s3675_s4 }
0x104c   :  { %v2477_v21 = vpop.permute.xlu0 %2476 }
0x104d   :  { %v2478_v22 = vrot.slane %v2477_v21, 2 }
0x104f   :  { %v2981_v24 = vmul.f32 -1.442695, %v2478_v22 }
0x106e   :  { %v2490_v42 = vpop.permute.xlu1 %2489 }
0x106f   :  { %v2492_v43 = vadd.f32 %v2490_v42, %v2486_v41 }
0x1071   :  { %3500 = vtanh.f32 %v2492_v43 }
0x1072   :  { %v2668_v47 = vpop.permute.xlu1 %2667  ;;  %3502 = vrcp.f32 %v2661_v45 }
0x1073   :  { %v2670_v51 = vadd.f32 %v2668_v47, %v2664_v46 }
0x1075   :  { %3504 = vtanh.f32 %v2670_v51 }
0x1076   :  { %3506 = vpow2.f32 %v2981_v24 }
0x107e   :  { %v3501_v52 = vpop.eup %3500 }
0x107f   :  { %2495 = vrot.lane.b32.xlu0 %v3501_v52, %s3675_s4  ;;  %v3503_v53 = vpop.eup %3502 }
0x1082   :  { %v3505_v13 = vpop.eup %3504 }
0x1083   :  { %v2672_v14 = vmul.f32 %v3505_v13, %v3503_v53  ;;  %v3507_v34 = vpop.eup %3506 }
0x1084   :  { %v2483_v28 = vadd.f32 1.0, %v3507_v34 }
0x1086   :  { %3508 = vrcp.f32 %v2483_v28 }
0x1093   :  { %v3509_v15 = vpop.eup %3508 }
0x10f1   :  { %v2496_v18 = vpop.permute.xlu0 %2495 }
0x10f2   :  { %v2498_v9 = vmul.f32 %v3509_v15, %v2496_v18 }
0x10f4   :  { %v2674_v55 = vsel %vm1765_vm1, %v2498_v9, %v2672_v14 }
0x10f5   :  { %3117 = vmatmul.mubr.f32.vlgmr.msra.gmra.mxu1 %v2674_v55 }
0x11b5   :  { %v2764_v35 = vpop.f32.mrf.mxu1 }
0x11b6   :  { %v2765_v20 = vadd.f32 %v3000_v48, %v2764_v35 }
0x11b7   :  { %v3118_v54 = vpop.f32.mrf.mxu1 }
0x11b8   :  { %2768 = vst [vmem:[#allocation15] sm:$0x3] %v2765_v20 }
0x11b9   :  { %3641 = shalt.err (!%p3638_p6)
}
0x11ba   :  { %2778 = dma.vmem_to_hbm [thread:$0]  %s2776_s24, 32, %s3998_s9, [#allocation6]  }
0x11bb   :  { %3658 = dma.done.wait [#allocation6], 32  }
0x11bc   :  { %3659 = vsyncadd [#allocation6], 4294967264 }
0x11bd   :  { %2782 = vsyncpa [#allocation5], 1 }
0x11be   :  { %2783 = vsyncpa [#allocation8], 1 }
0x11bf   :  { %2784 = vsyncpa [#allocation11], 1 }
0x11c0   :  { %2785 = vsyncpa [#allocation14], 1 }
0x11c1   :  { %2786 = vsyncpa [#allocation6], 1 }

</bundles_post_ra>
